<compile_context>
chip_gen: v7x
topology: tpu7x:2x2x1
jax: 0.10.0
libtpu: 0.0.40
codegen_flags: <defaults>
</compile_context>

<pallas_src>
import jax
import jax.numpy as jnp
from jax.experimental import pallas as pl
from jax.experimental.pallas import tpu as pltpu

HIDDEN_DIM = 128   # module's real hidden_dim -> lane-dense gates
INPUT_DIM = 3
OUTPUT_DIM = 4


def lstm_kernel(x_ref, wih_ref, b_ref, whh_ref, wfc_ref, bfc_ref, out_ref, xp_ref):
    """x_ref  : (T, B, D)  f32  time-major input (D = 3)
       wih_ref: (D, 4H)    f32  input->gates weight (pre-transposed, gate order [i,f,o,g])
       b_ref  : (1, 4H)    f32  b_ih + b_hh folded, same gate order
       whh_ref: (H, 4H)    bf16 recurrent weight (pre-transposed, same gate order)
       wfc_ref: (H, O)     f32  final FC weight (pre-transposed)
       bfc_ref: (1, O)     f32  final FC bias
       out_ref: (B, O)     f32  model output
       xp_ref : (T, B, 4H) f32  VMEM scratch for the time-parallel input projection
    """
    T, B, D = x_ref.shape
    H = whh_ref.shape[0]

    # ---- Time-parallel input projection, all timesteps at once (pure VPU: D=3
    #      broadcast-FMAs per gate slab, no MXU, no reshape). ----
    x = x_ref[...]                                     # (T, B, D) f32
    proj = x[:, :, 0:1] * wih_ref[0:1, :]              # (T, B, 4H)
    for d in range(1, D):                              # D is tiny & static
        proj = proj + x[:, :, d:d + 1] * wih_ref[d:d + 1, :]
    xp_ref[...] = proj + b_ref[...]                    # bias folded in once

    whh = whh_ref[...]                                 # (H, 4H) bf16, loaded once

    def step(t, carry):
        h, c = carry
        # Only the recurrence is on the serial path: one bf16 MXU op per timestep,
        # f32 accumulation (identical rounding to default MXU precision).
        gates = xp_ref[t] + jnp.dot(h.astype(jnp.bfloat16), whh,
                                    preferred_element_type=jnp.float32)
        # Gate layout [i, f, o | g]: one sigmoid on the contiguous lane-dense 3H
        # slab, one tanh on the last H lanes (H = 128 -> each gate is one vreg row).
        sig = jax.nn.sigmoid(gates[:, 0:3 * H])
        i_g = sig[:, 0 * H:1 * H]
        f_g = sig[:, 1 * H:2 * H]
        o_g = sig[:, 2 * H:3 * H]
        g_g = jnp.tanh(gates[:, 3 * H:4 * H])

        c_new = f_g * c + i_g * g_g
        h_new = o_g * jnp.tanh(c_new)
        return h_new, c_new

    h0 = jnp.zeros((B, H), jnp.float32)
    c0 = jnp.zeros((B, H), jnp.float32)
    # T is static -> fully unroll the recurrence (per perf review).
    h_last, _ = jax.lax.fori_loop(0, T, step, (h0, c0), unroll=True)

    # Final FC on the last hidden state: (B, H) @ (H, O) + b_fc
    out_ref[...] = (jnp.dot(h_last, wfc_ref[...],
                            preferred_element_type=jnp.float32)
                    + bfc_ref[...]).astype(out_ref.dtype)


def lstm_model_forward(x, kp):
    """x: (B, T, D) float32, batch_first (same as the PyTorch module input)."""
    B, T, D = x.shape
    H = kp["w_hh_t"].shape[0]
    O = kp["w_fc_t"].shape[1]

    # Time-major so the kernel's per-step slice xp_ref[t] is a contiguous tile.
    x_tm = jnp.transpose(x, (1, 0, 2)).astype(jnp.float32)   # (T, B, D)

    return pl.pallas_call(
        lstm_kernel,
        out_shape=jax.ShapeDtypeStruct((B, O), jnp.float32),
        grid_spec=pltpu.PrefetchScalarGridSpec(
            num_scalar_prefetch=0,
            grid=(1,),                                           # whole recurrence in one invocation
            in_specs=[
                pl.BlockSpec((T, B, D), lambda i: (0, 0, 0)),    # raw input, time-major
                pl.BlockSpec((D, 4 * H), lambda i: (0, 0)),      # W_ih^T
                pl.BlockSpec((1, 4 * H), lambda i: (0, 0)),      # b_ih + b_hh
                pl.BlockSpec((H, 4 * H), lambda i: (0, 0)),      # W_hh^T (bf16, loaded once)
                pl.BlockSpec((H, O), lambda i: (0, 0)),          # W_fc^T
                pl.BlockSpec((1, O), lambda i: (0, 0)),          # b_fc
            ],
            out_specs=pl.BlockSpec((B, O), lambda i: (0, 0)),
            scratch_shapes=[pltpu.VMEM((T, B, 4 * H), jnp.float32)],   # xp scratch
        ),
        compiler_params=pltpu.CompilerParams(
            dimension_semantics=("arbitrary",)),
    )(x_tm, kp["w_ih_t"], kp["b"], kp["w_hh_t"], kp["w_fc_t"], kp["b_fc"])


def init_params(key, input_dim, hidden_dim, output_dim):
    """Raw parameters in PyTorch nn.LSTM layout (gate row order [i, f, g, o])."""
    ks = jax.random.split(key, 6)
    scale = 1.0 / jnp.sqrt(hidden_dim)
    w_ih = jax.random.uniform(ks[0], (4 * hidden_dim, input_dim), jnp.float32, -scale, scale)
    w_hh = jax.random.uniform(ks[1], (4 * hidden_dim, hidden_dim), jnp.float32, -scale, scale)
    b_ih = jax.random.uniform(ks[2], (4 * hidden_dim,), jnp.float32, -scale, scale)
    b_hh = jax.random.uniform(ks[3], (4 * hidden_dim,), jnp.float32, -scale, scale)
    w_fc = jax.random.uniform(ks[4], (output_dim, hidden_dim), jnp.float32, -scale, scale)
    b_fc = jax.random.uniform(ks[5], (output_dim,), jnp.float32, -scale, scale)
    return {"w_ih": w_ih, "w_hh": w_hh, "b_ih": b_ih, "b_hh": b_hh,
            "w_fc": w_fc, "b_fc": b_fc}


def pack_params(raw):
    """Repack PyTorch-layout params for the kernel:
       gate rows reordered [i, f, g, o] -> [i, f, o, g], weights pre-transposed,
       the two LSTM biases folded into one (1, 4H) row, W_hh stored bf16."""
    H = raw["w_hh"].shape[1]
    perm = jnp.concatenate([
        jnp.arange(0 * H, 1 * H),   # i
        jnp.arange(1 * H, 2 * H),   # f
        jnp.arange(3 * H, 4 * H),   # o
        jnp.arange(2 * H, 3 * H),   # g
    ])
    return {
        "w_ih_t": raw["w_ih"][perm].T,                               # (D, 4H) f32
        "w_hh_t": raw["w_hh"][perm].T.astype(jnp.bfloat16),          # (H, 4H) bf16
        "b": (raw["b_ih"] + raw["b_hh"])[perm][None, :],             # (1, 4H) f32
        "w_fc_t": raw["w_fc"].T,                                     # (H, O)  f32
        "b_fc": raw["b_fc"][None, :],                                # (1, O)  f32
    }


def lstm_model_reference(x, raw):
    """Pure-JAX reference with PyTorch LSTM semantics (gate order [i, f, g, o])."""
    B, T, D = x.shape
    H = raw["w_hh"].shape[1]
    h = jnp.zeros((B, H), jnp.float32)
    c = jnp.zeros((B, H), jnp.float32)
    b = raw["b_ih"] + raw["b_hh"]
    for t in range(T):
        gates = x[:, t, :] @ raw["w_ih"].T + h @ raw["w_hh"].T + b
        i_g = jax.nn.sigmoid(gates[:, 0 * H:1 * H])
        f_g = jax.nn.sigmoid(gates[:, 1 * H:2 * H])
        g_g = jnp.tanh(gates[:, 2 * H:3 * H])
        o_g = jax.nn.sigmoid(gates[:, 3 * H:4 * H])
        c = f_g * c + i_g * g_g
        h = o_g * jnp.tanh(c)
    return h @ raw["w_fc"].T + raw["b_fc"]


if __name__ == "__main__":
    key = jax.random.PRNGKey(0)
    k_x, k_p = jax.random.split(key)

    B, T, D = 2, 8, INPUT_DIM
    x = jax.random.normal(k_x, (B, T, D), jnp.float32)
    raw = init_params(k_p, D, HIDDEN_DIM, OUTPUT_DIM)
    kp = pack_params(raw)

    out = lstm_model_forward(x, kp)
    out = jax.block_until_ready(out)

    ref = lstm_model_reference(x, raw)
    assert out.shape == (B, OUTPUT_DIM)
    # Tolerance covers the bf16 MXU operand path in the recurrence (identical to
    # XLA's default matmul precision on TPU); any semantic error would be orders
    # of magnitude larger.
    assert jnp.allclose(out, ref, atol=2e-3, rtol=1e-3), "mismatch vs reference"

    print("KERNEL_OK")
</pallas_src>

<mosaic_0001>
module attributes {stable_mosaic.version = 11 : i64} {
  func.func @lstm_kernel(%arg0: i32, %arg1: memref<8x2x3xf32, #tpu.memory_space<vmem>>, %arg2: memref<3x512xf32, #tpu.memory_space<vmem>>, %arg3: memref<1x512xf32, #tpu.memory_space<vmem>>, %arg4: memref<128x512xbf16, #tpu.memory_space<vmem>>, %arg5: memref<128x4xf32, #tpu.memory_space<vmem>>, %arg6: memref<1x4xf32, #tpu.memory_space<vmem>>, %arg7: memref<2x4xf32, #tpu.memory_space<vmem>>, %arg8: memref<8x2x512xf32, #tpu.memory_space<vmem>>) attributes {dimension_semantics = [#tpu.dimension_semantics<arbitrary>], iteration_bounds = array<i64: 1>, scalar_prefetch = 0 : i64, scratch_operands = 1 : i64, tpu.core_type = #tpu.core_type<tc>, window_params = [{pipeline_mode = #tpu.pipeline_mode<synchronous>, transform_indices = @transform_0, window_bounds = array<i64: 8, 2, 3>}, {pipeline_mode = #tpu.pipeline_mode<synchronous>, transform_indices = @transform_1, window_bounds = array<i64: 3, 512>}, {pipeline_mode = #tpu.pipeline_mode<synchronous>, transform_indices = @transform_2, window_bounds = array<i64: 1, 512>}, {pipeline_mode = #tpu.pipeline_mode<synchronous>, transform_indices = @transform_3, window_bounds = array<i64: 128, 512>}, {pipeline_mode = #tpu.pipeline_mode<synchronous>, transform_indices = @transform_4, window_bounds = array<i64: 128, 4>}, {pipeline_mode = #tpu.pipeline_mode<synchronous>, transform_indices = @transform_5, window_bounds = array<i64: 1, 4>}, {pipeline_mode = #tpu.pipeline_mode<synchronous>, transform_indices = @transform_6, window_bounds = array<i64: 2, 4>}]} {
    %c0 = arith.constant 0 : index
    %c0_0 = arith.constant 0 : index
    %c0_1 = arith.constant 0 : index
    %0 = vector.load %arg1[%c0, %c0_0, %c0_1] : memref<8x2x3xf32, #tpu.memory_space<vmem>>, vector<8x2x3xf32>
    %1 = vector.extract_strided_slice %0 {offsets = [0, 0, 0], sizes = [8, 2, 1], strides = [1, 1, 1]} : vector<8x2x3xf32> to vector<8x2x1xf32>
    %c0_2 = arith.constant 0 : index
    %c0_3 = arith.constant 0 : index
    %2 = vector.load %arg2[%c0_2, %c0_3] : memref<3x512xf32, #tpu.memory_space<vmem>>, vector<1x512xf32>
    %3 = vector.shape_cast %2 : vector<1x512xf32> to vector<1x1x512xf32>
    %4 = vector.broadcast %1 : vector<8x2x1xf32> to vector<8x2x512xf32>
    %5 = vector.broadcast %3 : vector<1x1x512xf32> to vector<8x2x512xf32>
    %6 = arith.mulf %4, %5 : vector<8x2x512xf32>
    %7 = vector.extract_strided_slice %0 {offsets = [0, 0, 1], sizes = [8, 2, 1], strides = [1, 1, 1]} : vector<8x2x3xf32> to vector<8x2x1xf32>
    %c1 = arith.constant 1 : index
    %c0_4 = arith.constant 0 : index
    %8 = vector.load %arg2[%c1, %c0_4] : memref<3x512xf32, #tpu.memory_space<vmem>>, vector<1x512xf32>
    %9 = vector.shape_cast %8 : vector<1x512xf32> to vector<1x1x512xf32>
    %10 = vector.broadcast %7 : vector<8x2x1xf32> to vector<8x2x512xf32>
    %11 = vector.broadcast %9 : vector<1x1x512xf32> to vector<8x2x512xf32>
    %12 = arith.mulf %10, %11 : vector<8x2x512xf32>
    %13 = arith.addf %6, %12 : vector<8x2x512xf32>
    %14 = vector.extract_strided_slice %0 {offsets = [0, 0, 2], sizes = [8, 2, 1], strides = [1, 1, 1]} : vector<8x2x3xf32> to vector<8x2x1xf32>
    %c2 = arith.constant 2 : index
    %c0_5 = arith.constant 0 : index
    %15 = vector.load %arg2[%c2, %c0_5] : memref<3x512xf32, #tpu.memory_space<vmem>>, vector<1x512xf32>
    %16 = vector.shape_cast %15 : vector<1x512xf32> to vector<1x1x512xf32>
    %17 = vector.broadcast %14 : vector<8x2x1xf32> to vector<8x2x512xf32>
    %18 = vector.broadcast %16 : vector<1x1x512xf32> to vector<8x2x512xf32>
    %19 = arith.mulf %17, %18 : vector<8x2x512xf32>
    %20 = arith.addf %13, %19 : vector<8x2x512xf32>
    %c0_6 = arith.constant 0 : index
    %c0_7 = arith.constant 0 : index
    %21 = vector.load %arg3[%c0_6, %c0_7] : memref<1x512xf32, #tpu.memory_space<vmem>>, vector<1x512xf32>
    %22 = vector.shape_cast %21 : vector<1x512xf32> to vector<1x1x512xf32>
    %23 = vector.broadcast %22 : vector<1x1x512xf32> to vector<8x2x512xf32>
    %24 = arith.addf %20, %23 : vector<8x2x512xf32>
    %c0_8 = arith.constant 0 : index
    %c0_9 = arith.constant 0 : index
    %c0_10 = arith.constant 0 : index
    %25 = vector.load %arg8[%c0_8, %c0_9, %c0_10] : memref<8x2x512xf32, #tpu.memory_space<vmem>>, vector<8x2x512xf32>
    tpu.vector_store %arg8[%c0_8, %c0_9, %c0_10], %24 {strides = array<i32>} : memref<8x2x512xf32, #tpu.memory_space<vmem>>, vector<8x2x512xf32>,
    %c0_11 = arith.constant 0 : index
    %c0_12 = arith.constant 0 : index
    %26 = vector.load %arg4[%c0_11, %c0_12] : memref<128x512xbf16, #tpu.memory_space<vmem>>, vector<128x512xbf16>
    %cst = arith.constant 0.000000e+00 : f32
    %27 = vector.broadcast %cst : f32 to vector<2x128xf32>
    %cst_13 = arith.constant 0.000000e+00 : f32
    %28 = vector.broadcast %cst_13 : f32 to vector<2x128xf32>
    %c0_i32 = arith.constant 0 : i32
    %29 = arith.index_cast %c0_i32 : i32 to index
    %c0_14 = arith.constant 0 : index
    %c0_15 = arith.constant 0 : index
    %30 = vector.load %arg8[%29, %c0_14, %c0_15] : memref<8x2x512xf32, #tpu.memory_space<vmem>>, vector<1x2x512xf32>
    %31 = vector.shape_cast %30 : vector<1x2x512xf32> to vector<2x512xf32>
    %32 = arith.truncf %27 : vector<2x128xf32> to vector<2x128xbf16>
    %cst_16 = arith.constant dense<0.000000e+00> : vector<2x512xf32>
    %33 = tpu.matmul %32, %26, %cst_16 {dimension_numbers = #tpu.dot_dimension_numbers<[1], [0], [0], [1], [0, 0, 1, 1], [], []>} : vector<2x128xbf16>, vector<128x512xbf16>, vector<2x512xf32> -> vector<2x512xf32>
    %34 = arith.addf %31, %33 : vector<2x512xf32>
    %35 = vector.extract_strided_slice %34 {offsets = [0, 0], sizes = [2, 384], strides = [1, 1]} : vector<2x512xf32> to vector<2x384xf32>
    %36 = arith.negf %35 : vector<2x384xf32>
    %37 = math.exp %36 : vector<2x384xf32>
    %cst_17 = arith.constant 1.000000e+00 : f32
    %38 = vector.broadcast %cst_17 : f32 to vector<2x384xf32>
    %39 = arith.addf %38, %37 : vector<2x384xf32>
    %40 = arith.divf %38, %39 : vector<2x384xf32>
    %41 = vector.extract_strided_slice %40 {offsets = [0, 0], sizes = [2, 128], strides = [1, 1]} : vector<2x384xf32> to vector<2x128xf32>
    %42 = vector.extract_strided_slice %40 {offsets = [0, 128], sizes = [2, 128], strides = [1, 1]} : vector<2x384xf32> to vector<2x128xf32>
    %43 = vector.extract_strided_slice %40 {offsets = [0, 256], sizes = [2, 128], strides = [1, 1]} : vector<2x384xf32> to vector<2x128xf32>
    %44 = vector.extract_strided_slice %34 {offsets = [0, 384], sizes = [2, 128], strides = [1, 1]} : vector<2x512xf32> to vector<2x128xf32>
    %45 = math.tanh %44 : vector<2x128xf32>
    %46 = arith.mulf %42, %28 : vector<2x128xf32>
    %47 = arith.mulf %41, %45 : vector<2x128xf32>
    %48 = arith.addf %46, %47 : vector<2x128xf32>
    %49 = math.tanh %48 : vector<2x128xf32>
    %50 = arith.mulf %43, %49 : vector<2x128xf32>
    %c1_i32 = arith.constant 1 : i32
    %51 = arith.index_cast %c1_i32 : i32 to index
    %c0_18 = arith.constant 0 : index
    %c0_19 = arith.constant 0 : index
    %52 = vector.load %arg8[%51, %c0_18, %c0_19] : memref<8x2x512xf32, #tpu.memory_space<vmem>>, vector<1x2x512xf32>
    %53 = vector.shape_cast %52 : vector<1x2x512xf32> to vector<2x512xf32>
    %54 = arith.truncf %50 : vector<2x128xf32> to vector<2x128xbf16>
    %cst_20 = arith.constant dense<0.000000e+00> : vector<2x512xf32>
    %55 = tpu.matmul %54, %26, %cst_20 {dimension_numbers = #tpu.dot_dimension_numbers<[1], [0], [0], [1], [0, 0, 1, 1], [], []>} : vector<2x128xbf16>, vector<128x512xbf16>, vector<2x512xf32> -> vector<2x512xf32>
    %56 = arith.addf %53, %55 : vector<2x512xf32>
    %57 = vector.extract_strided_slice %56 {offsets = [0, 0], sizes = [2, 384], strides = [1, 1]} : vector<2x512xf32> to vector<2x384xf32>
    %58 = arith.negf %57 : vector<2x384xf32>
    %59 = math.exp %58 : vector<2x384xf32>
    %cst_21 = arith.constant 1.000000e+00 : f32
    %60 = vector.broadcast %cst_21 : f32 to vector<2x384xf32>
    %61 = arith.addf %60, %59 : vector<2x384xf32>
    %62 = arith.divf %60, %61 : vector<2x384xf32>
    %63 = vector.extract_strided_slice %62 {offsets = [0, 0], sizes = [2, 128], strides = [1, 1]} : vector<2x384xf32> to vector<2x128xf32>
    %64 = vector.extract_strided_slice %62 {offsets = [0, 128], sizes = [2, 128], strides = [1, 1]} : vector<2x384xf32> to vector<2x128xf32>
    %65 = vector.extract_strided_slice %62 {offsets = [0, 256], sizes = [2, 128], strides = [1, 1]} : vector<2x384xf32> to vector<2x128xf32>
    %66 = vector.extract_strided_slice %56 {offsets = [0, 384], sizes = [2, 128], strides = [1, 1]} : vector<2x512xf32> to vector<2x128xf32>
    %67 = math.tanh %66 : vector<2x128xf32>
    %68 = arith.mulf %64, %48 : vector<2x128xf32>
    %69 = arith.mulf %63, %67 : vector<2x128xf32>
    %70 = arith.addf %68, %69 : vector<2x128xf32>
    %71 = math.tanh %70 : vector<2x128xf32>
    %72 = arith.mulf %65, %71 : vector<2x128xf32>
    %c2_i32 = arith.constant 2 : i32
    %73 = arith.index_cast %c2_i32 : i32 to index
    %c0_22 = arith.constant 0 : index
    %c0_23 = arith.constant 0 : index
    %74 = vector.load %arg8[%73, %c0_22, %c0_23] : memref<8x2x512xf32, #tpu.memory_space<vmem>>, vector<1x2x512xf32>
    %75 = vector.shape_cast %74 : vector<1x2x512xf32> to vector<2x512xf32>
    %76 = arith.truncf %72 : vector<2x128xf32> to vector<2x128xbf16>
    %cst_24 = arith.constant dense<0.000000e+00> : vector<2x512xf32>
    %77 = tpu.matmul %76, %26, %cst_24 {dimension_numbers = #tpu.dot_dimension_numbers<[1], [0], [0], [1], [0, 0, 1, 1], [], []>} : vector<2x128xbf16>, vector<128x512xbf16>, vector<2x512xf32> -> vector<2x512xf32>
    %78 = arith.addf %75, %77 : vector<2x512xf32>
    %79 = vector.extract_strided_slice %78 {offsets = [0, 0], sizes = [2, 384], strides = [1, 1]} : vector<2x512xf32> to vector<2x384xf32>
    %80 = arith.negf %79 : vector<2x384xf32>
    %81 = math.exp %80 : vector<2x384xf32>
    %cst_25 = arith.constant 1.000000e+00 : f32
    %82 = vector.broadcast %cst_25 : f32 to vector<2x384xf32>
    %83 = arith.addf %82, %81 : vector<2x384xf32>
    %84 = arith.divf %82, %83 : vector<2x384xf32>
    %85 = vector.extract_strided_slice %84 {offsets = [0, 0], sizes = [2, 128], strides = [1, 1]} : vector<2x384xf32> to vector<2x128xf32>
    %86 = vector.extract_strided_slice %84 {offsets = [0, 128], sizes = [2, 128], strides = [1, 1]} : vector<2x384xf32> to vector<2x128xf32>
    %87 = vector.extract_strided_slice %84 {offsets = [0, 256], sizes = [2, 128], strides = [1, 1]} : vector<2x384xf32> to vector<2x128xf32>
    %88 = vector.extract_strided_slice %78 {offsets = [0, 384], sizes = [2, 128], strides = [1, 1]} : vector<2x512xf32> to vector<2x128xf32>
    %89 = math.tanh %88 : vector<2x128xf32>
    %90 = arith.mulf %86, %70 : vector<2x128xf32>
    %91 = arith.mulf %85, %89 : vector<2x128xf32>
    %92 = arith.addf %90, %91 : vector<2x128xf32>
    %93 = math.tanh %92 : vector<2x128xf32>
    %94 = arith.mulf %87, %93 : vector<2x128xf32>
    %c3_i32 = arith.constant 3 : i32
    %95 = arith.index_cast %c3_i32 : i32 to index
    %c0_26 = arith.constant 0 : index
    %c0_27 = arith.constant 0 : index
    %96 = vector.load %arg8[%95, %c0_26, %c0_27] : memref<8x2x512xf32, #tpu.memory_space<vmem>>, vector<1x2x512xf32>
    %97 = vector.shape_cast %96 : vector<1x2x512xf32> to vector<2x512xf32>
    %98 = arith.truncf %94 : vector<2x128xf32> to vector<2x128xbf16>
    %cst_28 = arith.constant dense<0.000000e+00> : vector<2x512xf32>
    %99 = tpu.matmul %98, %26, %cst_28 {dimension_numbers = #tpu.dot_dimension_numbers<[1], [0], [0], [1], [0, 0, 1, 1], [], []>} : vector<2x128xbf16>, vector<128x512xbf16>, vector<2x512xf32> -> vector<2x512xf32>
    %100 = arith.addf %97, %99 : vector<2x512xf32>
    %101 = vector.extract_strided_slice %100 {offsets = [0, 0], sizes = [2, 384], strides = [1, 1]} : vector<2x512xf32> to vector<2x384xf32>
    %102 = arith.negf %101 : vector<2x384xf32>
    %103 = math.exp %102 : vector<2x384xf32>
    %cst_29 = arith.constant 1.000000e+00 : f32
    %104 = vector.broadcast %cst_29 : f32 to vector<2x384xf32>
    %105 = arith.addf %104, %103 : vector<2x384xf32>
    %106 = arith.divf %104, %105 : vector<2x384xf32>
    %107 = vector.extract_strided_slice %106 {offsets = [0, 0], sizes = [2, 128], strides = [1, 1]} : vector<2x384xf32> to vector<2x128xf32>
    %108 = vector.extract_strided_slice %106 {offsets = [0, 128], sizes = [2, 128], strides = [1, 1]} : vector<2x384xf32> to vector<2x128xf32>
    %109 = vector.extract_strided_slice %106 {offsets = [0, 256], sizes = [2, 128], strides = [1, 1]} : vector<2x384xf32> to vector<2x128xf32>
    %110 = vector.extract_strided_slice %100 {offsets = [0, 384], sizes = [2, 128], strides = [1, 1]} : vector<2x512xf32> to vector<2x128xf32>
    %111 = math.tanh %110 : vector<2x128xf32>
    %112 = arith.mulf %108, %92 : vector<2x128xf32>
    %113 = arith.mulf %107, %111 : vector<2x128xf32>
    %114 = arith.addf %112, %113 : vector<2x128xf32>
    %115 = math.tanh %114 : vector<2x128xf32>
    %116 = arith.mulf %109, %115 : vector<2x128xf32>
    %c4_i32 = arith.constant 4 : i32
    %117 = arith.index_cast %c4_i32 : i32 to index
    %c0_30 = arith.constant 0 : index
    %c0_31 = arith.constant 0 : index
    %118 = vector.load %arg8[%117, %c0_30, %c0_31] : memref<8x2x512xf32, #tpu.memory_space<vmem>>, vector<1x2x512xf32>
    %119 = vector.shape_cast %118 : vector<1x2x512xf32> to vector<2x512xf32>
    %120 = arith.truncf %116 : vector<2x128xf32> to vector<2x128xbf16>
    %cst_32 = arith.constant dense<0.000000e+00> : vector<2x512xf32>
    %121 = tpu.matmul %120, %26, %cst_32 {dimension_numbers = #tpu.dot_dimension_numbers<[1], [0], [0], [1], [0, 0, 1, 1], [], []>} : vector<2x128xbf16>, vector<128x512xbf16>, vector<2x512xf32> -> vector<2x512xf32>
    %122 = arith.addf %119, %121 : vector<2x512xf32>
    %123 = vector.extract_strided_slice %122 {offsets = [0, 0], sizes = [2, 384], strides = [1, 1]} : vector<2x512xf32> to vector<2x384xf32>
    %124 = arith.negf %123 : vector<2x384xf32>
    %125 = math.exp %124 : vector<2x384xf32>
    %cst_33 = arith.constant 1.000000e+00 : f32
    %126 = vector.broadcast %cst_33 : f32 to vector<2x384xf32>
    %127 = arith.addf %126, %125 : vector<2x384xf32>
    %128 = arith.divf %126, %127 : vector<2x384xf32>
    %129 = vector.extract_strided_slice %128 {offsets = [0, 0], sizes = [2, 128], strides = [1, 1]} : vector<2x384xf32> to vector<2x128xf32>
    %130 = vector.extract_strided_slice %128 {offsets = [0, 128], sizes = [2, 128], strides = [1, 1]} : vector<2x384xf32> to vector<2x128xf32>
    %131 = vector.extract_strided_slice %128 {offsets = [0, 256], sizes = [2, 128], strides = [1, 1]} : vector<2x384xf32> to vector<2x128xf32>
    %132 = vector.extract_strided_slice %122 {offsets = [0, 384], sizes = [2, 128], strides = [1, 1]} : vector<2x512xf32> to vector<2x128xf32>
    %133 = math.tanh %132 : vector<2x128xf32>
    %134 = arith.mulf %130, %114 : vector<2x128xf32>
    %135 = arith.mulf %129, %133 : vector<2x128xf32>
    %136 = arith.addf %134, %135 : vector<2x128xf32>
    %137 = math.tanh %136 : vector<2x128xf32>
    %138 = arith.mulf %131, %137 : vector<2x128xf32>
    %c5_i32 = arith.constant 5 : i32
    %139 = arith.index_cast %c5_i32 : i32 to index
    %c0_34 = arith.constant 0 : index
    %c0_35 = arith.constant 0 : index
    %140 = vector.load %arg8[%139, %c0_34, %c0_35] : memref<8x2x512xf32, #tpu.memory_space<vmem>>, vector<1x2x512xf32>
    %141 = vector.shape_cast %140 : vector<1x2x512xf32> to vector<2x512xf32>
    %142 = arith.truncf %138 : vector<2x128xf32> to vector<2x128xbf16>
    %cst_36 = arith.constant dense<0.000000e+00> : vector<2x512xf32>
    %143 = tpu.matmul %142, %26, %cst_36 {dimension_numbers = #tpu.dot_dimension_numbers<[1], [0], [0], [1], [0, 0, 1, 1], [], []>} : vector<2x128xbf16>, vector<128x512xbf16>, vector<2x512xf32> -> vector<2x512xf32>
    %144 = arith.addf %141, %143 : vector<2x512xf32>
    %145 = vector.extract_strided_slice %144 {offsets = [0, 0], sizes = [2, 384], strides = [1, 1]} : vector<2x512xf32> to vector<2x384xf32>
    %146 = arith.negf %145 : vector<2x384xf32>
    %147 = math.exp %146 : vector<2x384xf32>
    %cst_37 = arith.constant 1.000000e+00 : f32
    %148 = vector.broadcast %cst_37 : f32 to vector<2x384xf32>
    %149 = arith.addf %148, %147 : vector<2x384xf32>
    %150 = arith.divf %148, %149 : vector<2x384xf32>
    %151 = vector.extract_strided_slice %150 {offsets = [0, 0], sizes = [2, 128], strides = [1, 1]} : vector<2x384xf32> to vector<2x128xf32>
    %152 = vector.extract_strided_slice %150 {offsets = [0, 128], sizes = [2, 128], strides = [1, 1]} : vector<2x384xf32> to vector<2x128xf32>
    %153 = vector.extract_strided_slice %150 {offsets = [0, 256], sizes = [2, 128], strides = [1, 1]} : vector<2x384xf32> to vector<2x128xf32>
    %154 = vector.extract_strided_slice %144 {offsets = [0, 384], sizes = [2, 128], strides = [1, 1]} : vector<2x512xf32> to vector<2x128xf32>
    %155 = math.tanh %154 : vector<2x128xf32>
    %156 = arith.mulf %152, %136 : vector<2x128xf32>
    %157 = arith.mulf %151, %155 : vector<2x128xf32>
    %158 = arith.addf %156, %157 : vector<2x128xf32>
    %159 = math.tanh %158 : vector<2x128xf32>
    %160 = arith.mulf %153, %159 : vector<2x128xf32>
    %c6_i32 = arith.constant 6 : i32
    %161 = arith.index_cast %c6_i32 : i32 to index
    %c0_38 = arith.constant 0 : index
    %c0_39 = arith.constant 0 : index
    %162 = vector.load %arg8[%161, %c0_38, %c0_39] : memref<8x2x512xf32, #tpu.memory_space<vmem>>, vector<1x2x512xf32>
    %163 = vector.shape_cast %162 : vector<1x2x512xf32> to vector<2x512xf32>
    %164 = arith.truncf %160 : vector<2x128xf32> to vector<2x128xbf16>
    %cst_40 = arith.constant dense<0.000000e+00> : vector<2x512xf32>
    %165 = tpu.matmul %164, %26, %cst_40 {dimension_numbers = #tpu.dot_dimension_numbers<[1], [0], [0], [1], [0, 0, 1, 1], [], []>} : vector<2x128xbf16>, vector<128x512xbf16>, vector<2x512xf32> -> vector<2x512xf32>
    %166 = arith.addf %163, %165 : vector<2x512xf32>
    %167 = vector.extract_strided_slice %166 {offsets = [0, 0], sizes = [2, 384], strides = [1, 1]} : vector<2x512xf32> to vector<2x384xf32>
    %168 = arith.negf %167 : vector<2x384xf32>
    %169 = math.exp %168 : vector<2x384xf32>
    %cst_41 = arith.constant 1.000000e+00 : f32
    %170 = vector.broadcast %cst_41 : f32 to vector<2x384xf32>
    %171 = arith.addf %170, %169 : vector<2x384xf32>
    %172 = arith.divf %170, %171 : vector<2x384xf32>
    %173 = vector.extract_strided_slice %172 {offsets = [0, 0], sizes = [2, 128], strides = [1, 1]} : vector<2x384xf32> to vector<2x128xf32>
    %174 = vector.extract_strided_slice %172 {offsets = [0, 128], sizes = [2, 128], strides = [1, 1]} : vector<2x384xf32> to vector<2x128xf32>
    %175 = vector.extract_strided_slice %172 {offsets = [0, 256], sizes = [2, 128], strides = [1, 1]} : vector<2x384xf32> to vector<2x128xf32>
    %176 = vector.extract_strided_slice %166 {offsets = [0, 384], sizes = [2, 128], strides = [1, 1]} : vector<2x512xf32> to vector<2x128xf32>
    %177 = math.tanh %176 : vector<2x128xf32>
    %178 = arith.mulf %174, %158 : vector<2x128xf32>
    %179 = arith.mulf %173, %177 : vector<2x128xf32>
    %180 = arith.addf %178, %179 : vector<2x128xf32>
    %181 = math.tanh %180 : vector<2x128xf32>
    %182 = arith.mulf %175, %181 : vector<2x128xf32>
    %c7_i32 = arith.constant 7 : i32
    %183 = arith.index_cast %c7_i32 : i32 to index
    %c0_42 = arith.constant 0 : index
    %c0_43 = arith.constant 0 : index
    %184 = vector.load %arg8[%183, %c0_42, %c0_43] : memref<8x2x512xf32, #tpu.memory_space<vmem>>, vector<1x2x512xf32>
    %185 = vector.shape_cast %184 : vector<1x2x512xf32> to vector<2x512xf32>
    %186 = arith.truncf %182 : vector<2x128xf32> to vector<2x128xbf16>
    %cst_44 = arith.constant dense<0.000000e+00> : vector<2x512xf32>
    %187 = tpu.matmul %186, %26, %cst_44 {dimension_numbers = #tpu.dot_dimension_numbers<[1], [0], [0], [1], [0, 0, 1, 1], [], []>} : vector<2x128xbf16>, vector<128x512xbf16>, vector<2x512xf32> -> vector<2x512xf32>
    %188 = arith.addf %185, %187 : vector<2x512xf32>
    %189 = vector.extract_strided_slice %188 {offsets = [0, 0], sizes = [2, 384], strides = [1, 1]} : vector<2x512xf32> to vector<2x384xf32>
    %190 = arith.negf %189 : vector<2x384xf32>
    %191 = math.exp %190 : vector<2x384xf32>
    %cst_45 = arith.constant 1.000000e+00 : f32
    %192 = vector.broadcast %cst_45 : f32 to vector<2x384xf32>
    %193 = arith.addf %192, %191 : vector<2x384xf32>
    %194 = arith.divf %192, %193 : vector<2x384xf32>
    %195 = vector.extract_strided_slice %194 {offsets = [0, 0], sizes = [2, 128], strides = [1, 1]} : vector<2x384xf32> to vector<2x128xf32>
    %196 = vector.extract_strided_slice %194 {offsets = [0, 128], sizes = [2, 128], strides = [1, 1]} : vector<2x384xf32> to vector<2x128xf32>
    %197 = vector.extract_strided_slice %194 {offsets = [0, 256], sizes = [2, 128], strides = [1, 1]} : vector<2x384xf32> to vector<2x128xf32>
    %198 = vector.extract_strided_slice %188 {offsets = [0, 384], sizes = [2, 128], strides = [1, 1]} : vector<2x512xf32> to vector<2x128xf32>
    %199 = math.tanh %198 : vector<2x128xf32>
    %200 = arith.mulf %196, %180 : vector<2x128xf32>
    %201 = arith.mulf %195, %199 : vector<2x128xf32>
    %202 = arith.addf %200, %201 : vector<2x128xf32>
    %203 = math.tanh %202 : vector<2x128xf32>
    %204 = arith.mulf %197, %203 : vector<2x128xf32>
    %c8_i32 = arith.constant 8 : i32
    %c0_46 = arith.constant 0 : index
    %c0_47 = arith.constant 0 : index
    %205 = vector.load %arg5[%c0_46, %c0_47] : memref<128x4xf32, #tpu.memory_space<vmem>>, vector<128x4xf32>
    %cst_48 = arith.constant dense<0.000000e+00> : vector<2x4xf32>
    %206 = tpu.matmul %204, %205, %cst_48 {dimension_numbers = #tpu.dot_dimension_numbers<[1], [0], [0], [1], [0, 0, 1, 1], [], []>} : vector<2x128xf32>, vector<128x4xf32>, vector<2x4xf32> -> vector<2x4xf32>
    %c0_49 = arith.constant 0 : index
    %c0_50 = arith.constant 0 : index
    %207 = vector.load %arg6[%c0_49, %c0_50] : memref<1x4xf32, #tpu.memory_space<vmem>>, vector<1x4xf32>
    %208 = vector.broadcast %207 : vector<1x4xf32> to vector<2x4xf32>
    %209 = arith.addf %206, %208 : vector<2x4xf32>
    %c0_51 = arith.constant 0 : index
    %c0_52 = arith.constant 0 : index
    %210 = vector.load %arg7[%c0_51, %c0_52] : memref<2x4xf32, #tpu.memory_space<vmem>>, vector<2x4xf32>
    tpu.vector_store %arg7[%c0_51, %c0_52], %209 {strides = array<i32>} : memref<2x4xf32, #tpu.memory_space<vmem>>, vector<2x4xf32>,
    return
  }
  func.func @transform_0(%arg0: i32) -> (i32, i32, i32) {
    %c0_i32 = arith.constant 0 : i32
    %c0_i32_0 = arith.constant 0 : i32
    %c0_i32_1 = arith.constant 0 : i32
    %c0_i32_2 = arith.constant 0 : i32
    return %c0_i32, %c0_i32_0, %c0_i32_1 : i32, i32, i32
  }
  func.func @transform_1(%arg0: i32) -> (i32, i32) {
    %c0_i32 = arith.constant 0 : i32
    %c0_i32_0 = arith.constant 0 : i32
    %c0_i32_1 = arith.constant 0 : i32
    return %c0_i32, %c0_i32_0 : i32, i32
  }
  func.func @transform_2(%arg0: i32) -> (i32, i32) {
    %c0_i32 = arith.constant 0 : i32
    %c0_i32_0 = arith.constant 0 : i32
    %c0_i32_1 = arith.constant 0 : i32
    return %c0_i32, %c0_i32_0 : i32, i32
  }
  func.func @transform_3(%arg0: i32) -> (i32, i32) {
    %c0_i32 = arith.constant 0 : i32
    %c0_i32_0 = arith.constant 0 : i32
    %c0_i32_1 = arith.constant 0 : i32
    return %c0_i32, %c0_i32_0 : i32, i32
  }
  func.func @transform_4(%arg0: i32) -> (i32, i32) {
    %c0_i32 = arith.constant 0 : i32
    %c0_i32_0 = arith.constant 0 : i32
    %c0_i32_1 = arith.constant 0 : i32
    return %c0_i32, %c0_i32_0 : i32, i32
  }
  func.func @transform_5(%arg0: i32) -> (i32, i32) {
    %c0_i32 = arith.constant 0 : i32
    %c0_i32_0 = arith.constant 0 : i32
    %c0_i32_1 = arith.constant 0 : i32
    return %c0_i32, %c0_i32_0 : i32, i32
  }
  func.func @transform_6(%arg0: i32) -> (i32, i32) {
    %c0_i32 = arith.constant 0 : i32
    %c0_i32_0 = arith.constant 0 : i32
    %c0_i32_1 = arith.constant 0 : i32
    return %c0_i32, %c0_i32_0 : i32, i32
  }
}

</mosaic_0001>

<bundles_post_ra>
// kernel: tpu_custom_call.1
= control target key start
LH: loop header
LB: loop body
LE: loop exit
PB: predicated region body
PF: predicated region fallthrough
CT: control target
= control target key end

     0   :  { %11 = vsyncpa [#allocation4], 0  ;;  %s3084_s0 = inlined_call_operand.vmem [shape: f32[8,2,3], index: 0, kind: input, shape index: {}]   ;;  %s3085_s1 = inlined_call_operand.vmem [shape: f32[3,512], index: 1, kind: input, shape index: {}]   ;;  %s3086_s2 = inlined_call_operand.vmem [shape: f32[1,512], index: 2, kind: input, shape index: {}]   ;;  %s3087_s3 = inlined_call_operand.hbm [shape: bf16[128,512], index: 3, kind: input, shape index: {}]   ;;  %s3088_s4 = inlined_call_operand.vmem [shape: f32[128,4], index: 4, kind: input, shape index: {}]   ;;  %s3089_s5 = inlined_call_operand.vmem [shape: f32[1,4], index: 5, kind: input, shape index: {}]   ;;  %s3090_s6 = inlined_call_operand.hbm [shape: f32[2,4], index: 6, kind: output, shape index: {}]  }
   0x1   :  { %12 = vsyncpa [#allocation5], 0  ;;  %s2283_s21 = smov [#allocation3]   ;;  %s2235_s25 = scalar_lea.hbm %s3087_s3, 4096 }
   0x2   :  { %s24_s22 = sshll.u32 %s2283_s21, 4  ;;  %p2236_p0 = scmp.ne.s32.totalorder %s3087_s3, %s2235_s25  ;;  %s25_s22 = int_to_ptr.vmem [resolvable:$true] %s24_s22 }
   0x3   :  { %p2239_p1 = scmp.lt.u32.totalorder %s2235_s25, %s3087_s3 }
   0x5   :  { %p2241_p2 = pnand %p2239_p1, %p2236_p0 }
   0x7   :  { %2244 = shalt.err (!%p2241_p2)
}
   0x8   :  { %s2245_s30 = scalar_lea.vmem %s25_s22, 4096  ;;  %p2250_p4 = scmp.lt.s32.totalorder %s25_s22, %s25_s22 }
   0x9   :  { %p2246_p3 = scmp.ne.s32.totalorder %s25_s22, %s2245_s30  ;;  %p2251_p5 = scmp.lt.s32.totalorder %s2245_s30, %s2245_s30 }
   0xb   :  { %p2252_p6 = por %p2251_p5, %p2250_p4 }
   0xd   :  { %p2253_p7 = pnand %p2252_p6, %p2246_p3 }
   0xf   :  { %2256 = shalt.err (!%p2253_p7)
}
  0x10   :  { %s2284_s7 = smov 256   ;;  %s2285_s8 = smov 16  }
  0x11   :  { %30 = dma.hbm_to_vmem [thread:$0]  %s3087_s3, 4096, %s25_s22, [#allocation4], %s2284_s7, %s2284_s7, %s2285_s8  }
  0x12   :  { %2279 = dma.done.wait [#allocation4], 4096  }
  0x13   :  { %2280 = vsyncadd [#allocation4], 4294963200  ;;  %v3095_v0 = vmov 0   ;;  %v3093_v1 = vmov 2   ;;  %v2345_v2 = vld [vmem:[#allocation3 + $0x4] ss:$16 sps:$4 sm:$0xff]   ;;  %v89_v38 = vlaneseq }
  0x14   :  { %842 = vmatprep.mubr.bf16.mxu0 %v3095_v0  ;;  %883 = vmatprep.mubr.bf16.mxu1 %v3095_v0  ;;  %3137 = vst [vmem:[#allocation9_spill] sm:$0xff] %v2345_v2  ;;  %v2347_v3 = vld [vmem:[#allocation3 + $0xc] ss:$16 sps:$4 sm:$0xff]   ;;  %v2350_v4 = vld [vmem:[#allocation3] ss:$16 sps:$4 sm:$0xff]   ;;  %v3091_v33 = vmov 1  }
  0x15   :  { %2071 = vset.pattern.permute.xlu0 %v3095_v0  ;;  %2073 = vset.pattern.permute.xlu1 %v3093_v1  ;;  %3138 = vst [vmem:[#allocation10_spill] sm:$0xff] %v2347_v3  ;;  %v2352_v5 = vld [vmem:[#allocation3 + $0x8] ss:$16 sps:$4 sm:$0xff]   ;;  %v2355_v6 = vld [vmem:[#allocation3 + $0x24] ss:$16 sps:$4 sm:$0xff]   ;;  %v90_v39 = vshrl.u32 %v89_v38, 7 }
  0x16   :  { %810 = vmatprep.subr.bf16.mxu0 %v2345_v2  ;;  %851 = vmatprep.subr.bf16.mxu1 %v2347_v3  ;;  %v2359_v7 = vld [vmem:[#allocation3 + $0x2c] ss:$16 sps:$4 sm:$0xff]   ;;  %v2361_v8 = vld [vmem:[#allocation3 + $0x20] ss:$16 sps:$4 sm:$0xff]   ;;  %v2364_v9 = vld [vmem:[#allocation3 + $0x28] ss:$16 sps:$4 sm:$0xff]  }
  0x17   :  { %811 = vmatpush1.bf16.msra.mxu0 %v2350_v4  ;;  %852 = vmatpush1.bf16.msra.mxu1 %v2352_v5  ;;  %v2367_v10 = vld [vmem:[#allocation3 + $0x44] ss:$16 sps:$4 sm:$0xff]   ;;  %v2369_v11 = vld [vmem:[#allocation3 + $0x4c] ss:$16 sps:$4 sm:$0xff]   ;;  %v2371_v12 = vld [vmem:[#allocation3 + $0x40] ss:$16 sps:$4 sm:$0xff]  }
  0x18   :  { %812 = vmatprep.subr.bf16.mxu0 %v2355_v6  ;;  %853 = vmatprep.subr.bf16.mxu1 %v2359_v7  ;;  %v2373_v13 = vld [vmem:[#allocation3 + $0x48] ss:$16 sps:$4 sm:$0xff]   ;;  %v2377_v14 = vld [vmem:[#allocation3 + $0x64] ss:$16 sps:$4 sm:$0xff]   ;;  %v2381_v15 = vld [vmem:[#allocation3 + $0x6c] ss:$16 sps:$4 sm:$0xff]  }
  0x19   :  { %v2383_v16 = vld [vmem:[#allocation3 + $0x60] ss:$16 sps:$4 sm:$0xff]   ;;  %v2387_v17 = vld [vmem:[#allocation3 + $0x68] ss:$16 sps:$4 sm:$0xff]   ;;  %v2389_v18 = vld [vmem:[#allocation3 + $0x84] ss:$16 sps:$4 sm:$0xff]  }
  0x1a   :  { %v2393_v19 = vld [vmem:[#allocation3 + $0x8c] ss:$16 sps:$4 sm:$0xff]   ;;  %v2395_v20 = vld [vmem:[#allocation3 + $0x80] ss:$16 sps:$4 sm:$0xff]   ;;  %v2397_v21 = vld [vmem:[#allocation3 + $0x88] ss:$16 sps:$4 sm:$0xff]  }
  0x1b   :  { %813 = vmatpush1.bf16.msra.mxu0 %v2361_v8  ;;  %854 = vmatpush1.bf16.msra.mxu1 %v2364_v9  ;;  %v2401_v22 = vld [vmem:[#allocation3 + $0xa4] ss:$16 sps:$4 sm:$0xff]   ;;  %v2405_v23 = vld [vmem:[#allocation3 + $0xac] ss:$16 sps:$4 sm:$0xff]   ;;  %v2409_v24 = vld [vmem:[#allocation3 + $0xa0] ss:$16 sps:$4 sm:$0xff]  }
  0x1c   :  { %814 = vmatprep.subr.bf16.mxu0 %v2367_v10  ;;  %855 = vmatprep.subr.bf16.mxu1 %v2369_v11  ;;  %v2411_v25 = vld [vmem:[#allocation3 + $0xa8] ss:$16 sps:$4 sm:$0xff]   ;;  %v2415_v26 = vld [vmem:[#allocation3 + $0xc4] ss:$16 sps:$4 sm:$0xff]   ;;  %v2417_v27 = vld [vmem:[#allocation3 + $0xcc] ss:$16 sps:$4 sm:$0xff]  }
  0x1d   :  { %v39_v28 = vld [vmem:[%s3084_s0] sm:$0x3]  ;;  %v2426_v30 = vld [vmem:[#allocation3 + $0xc8] ss:$16 sps:$4 sm:$0xff]   ;;  %v2430_v31 = vld [vmem:[#allocation3 + $0xe4] ss:$16 sps:$4 sm:$0xff]  }
  0x1e   :  { %50 = vperm.xlu0 %2071, %v39_v28   ;;  %263 = vperm.xlu1 %2073, %v39_v28   ;;  %v2424_v29 = vld [vmem:[#allocation3 + $0xc0] ss:$16 sps:$4 sm:$0xff]   ;;  %v2432_v32 = vld [vmem:[#allocation3 + $0xec] ss:$16 sps:$4 sm:$0xff]   ;;  %v2440_v35 = vld [vmem:[#allocation3 + $0xe8] ss:$16 sps:$4 sm:$0xff]  }
  0x1f   :  { %815 = vmatpush1.bf16.msra.mxu0 %v2371_v12  ;;  %856 = vmatpush1.bf16.msra.mxu1 %v2373_v13  ;;  %v2438_v34 = vld [vmem:[#allocation3 + $0xe0] ss:$16 sps:$4 sm:$0xff]   ;;  %3140 = vst [vmem:[#allocation12_spill] sm:$0xff] %v2440_v35  ;;  %v41_v37 = vld [vmem:[%s3084_s0 + $0x4] sm:$0x3]  ;;  %v91_v40 = vsub.s32 0, %v90_v39 }
  0x20   :  { %816 = vmatprep.subr.bf16.mxu0 %v2377_v14  ;;  %857 = vmatprep.subr.bf16.mxu1 %v2381_v15  ;;  %3139 = vst [vmem:[#allocation11_spill] sm:$0xff] %v2438_v34  ;;  %v40_v36 = vld [vmem:[%s3084_s0 + $0x2] sm:$0x3]  ;;  %v95_v41 = vsub.s32 1, %v90_v39  ;;  %v99_v42 = vsub.s32 2, %v90_v39  ;;  %v103_v43 = vsub.s32 3, %v90_v39 }
  0x21   :  { %v47_v45 = vld [vmem:[%s3085_s1] ss:$4 sm:$0xf]  ;;  %v1941_v46 = vld [vmem:[%s3085_s1 + $0x1] ss:$4 sm:$0xf] }
  0x22   :  { %2072 = vset.pattern.permute.xlu0 %v3091_v33  ;;  %2074 = vset.pattern.permute.xlu1 %v3095_v0  ;;  %v2502_v47 = vrot.slane %v47_v45, %v91_v40  ;;  %v2504_v48 = vrot.slane %v47_v45, %v95_v41  ;;  %v2506_v49 = vrot.slane %v47_v45, %v99_v42  ;;  %v1942_v51 = vld [vmem:[%s3085_s1 + $0x2] ss:$4 sm:$0xf]  ;;  %vm2291_vm0 = vmmov 0   ;;  %s2293_s11 = smov [#allocation6]  }
  0x23   :  { %817 = vmatpush1.bf16.msra.mxu0 %v2383_v16  ;;  %858 = vmatpush1.bf16.msra.mxu1 %v2387_v17  ;;  %v2508_v50 = vrot.slane %v47_v45, %v103_v43  ;;  %v2513_v52 = vrot.slane %v1941_v46, %v91_v40  ;;  %v2515_v53 = vrot.slane %v1941_v46, %v95_v41  ;;  %s1932_s12 = sshll.u32 %s2293_s11, 4  ;;  %vm1924_vm1 = vcmask 25600   ;;  %s1933_s12 = int_to_ptr.vmem [resolvable:$true] %s1932_s12 }
  0x24   :  { %818 = vmatprep.subr.bf16.mxu0 %v2389_v18  ;;  %859 = vmatprep.subr.bf16.mxu1 %v2393_v19  ;;  %3141 = vst [vmem:[#allocation13_spill] sm:$0xff] %v2502_v47  ;;  %3142 = vst [vmem:[#allocation14_spill] sm:$0xff] %v2504_v48  ;;  %v2517_v54 = vrot.slane %v1941_v46, %v99_v42  ;;  %v2519_v55 = vrot.slane %v1941_v46, %v103_v43  ;;  %s2257_s13 = scalar_lea.vmem %s1933_s12, 32  ;;  %p2262_p9 = scmp.lt.s32.totalorder %s1933_s12, %s1933_s12 }
  0x25   :  { %144 = vperm.xlu0 %2072, %v39_v28   ;;  %55 = vperm.xlu1 %2074, %v40_v36   ;;  %3143 = vst [vmem:[#allocation15_spill] sm:$0xff] %v2506_v49  ;;  %3144 = vst [vmem:[#allocation16_spill] sm:$0xff] %v2508_v50  ;;  %v2521_v57 = vrot.slane %v1942_v51, %v91_v40  ;;  %v2523_v58 = vrot.slane %v1942_v51, %v95_v41  ;;  %p2258_p8 = scmp.ne.s32.totalorder %s1933_s12, %s2257_s13  ;;  %p2263_p10 = scmp.lt.s32.totalorder %s2257_s13, %s2257_s13 }
  0x26   :  { %3145 = vst [vmem:[#allocation17_spill] sm:$0xff] %v2513_v52  ;;  %3146 = vst [vmem:[#allocation18_spill] sm:$0xff] %v2515_v53  ;;  %v2525_v59 = vrot.slane %v1942_v51, %v99_v42  ;;  %v2527_v60 = vrot.slane %v1942_v51, %v103_v43 }
  0x27   :  { %819 = vmatpush1.bf16.msra.mxu0 %v2395_v20  ;;  %860 = vmatpush1.bf16.msra.mxu1 %v2397_v21  ;;  %3147 = vst [vmem:[#allocation19_spill] sm:$0xff] %v2517_v54  ;;  %3148 = vst [vmem:[#allocation20_spill] sm:$0xff] %v2519_v55  ;;  %p2264_p11 = por %p2263_p10, %p2262_p9 }
  0x28   :  { %820 = vmatprep.subr.bf16.mxu0 %v2401_v22  ;;  %861 = vmatprep.subr.bf16.mxu1 %v2405_v23  ;;  %3149 = vst [vmem:[#allocation21_spill] sm:$0xff] %v2521_v57  ;;  %3150 = vst [vmem:[#allocation22_spill] sm:$0xff] %v2523_v58 }
  0x29   :  { %2076 = vset.pattern.permute.xlu0 %v3093_v1  ;;  %2075 = vset.pattern.permute.xlu1 %v3091_v33  ;;  %3151 = vst [vmem:[#allocation23_spill] sm:$0xff] %v2525_v59  ;;  %p2265_p12 = pnand %p2264_p11, %p2258_p8 }
  0x2a   :  { %267 = vperm.xlu0 %2076, %v40_v36   ;;  %148 = vperm.xlu1 %2075, %v40_v36  }
  0x2b   :  { %821 = vmatpush1.bf16.msra.mxu0 %v2409_v24  ;;  %862 = vmatpush1.bf16.msra.mxu1 %v2411_v25 }
  0x2c   :  { %822 = vmatprep.subr.bf16.mxu0 %v2415_v26  ;;  %863 = vmatprep.subr.bf16.mxu1 %v2417_v27 }
  0x2e   :  { %271 = vperm.xlu0 %2076, %v41_v37   ;;  %2077 = vset.pattern.permute.xlu1 %v3095_v0 }
  0x2f   :  { %823 = vmatpush1.bf16.msra.mxu0 %v2424_v29  ;;  %864 = vmatpush1.bf16.msra.mxu1 %v2426_v30 }
  0x30   :  { %824 = vmatprep.subr.bf16.mxu0 %v2430_v31  ;;  %865 = vmatprep.subr.bf16.mxu1 %v2432_v32 }
  0x31   :  { %60 = vperm.xlu1 %2077, %v41_v37  }
  0x32   :  { %2080 = vset.pattern.permute.xlu0 %v3091_v33 }
  0x33   :  { %825 = vmatpush1.bf16.msra.mxu0 %v2438_v34  ;;  %866 = vmatpush1.bf16.msra.mxu1 %v2440_v35 }
  0x34   :  { %938 = vmatprep.subr.bf16.mxu0 %v2345_v2  ;;  %979 = vmatprep.subr.bf16.mxu1 %v2347_v3 }
  0x35   :  { %2078 = vset.pattern.permute.xlu1 %v3091_v33 }
  0x36   :  { %843 = vmatmul.mubr.bf16.vlgmr.msra.gmra.mrb[0].mxu0 %v3095_v0  ;;  %884 = vmatmul.mubr.bf16.vlgmr.msra.gmra.mrb[0].mxu1 %v3095_v0 }
  0x37   :  { %939 = vmatpush1.bf16.msra.mxu0 %v2350_v4  ;;  %980 = vmatpush1.bf16.msra.mxu1 %v2352_v5 }
  0x38   :  { %940 = vmatprep.subr.bf16.mxu0 %v2355_v6  ;;  %981 = vmatprep.subr.bf16.mxu1 %v2359_v7 }
  0x39   :  { %970 = vmatprep.mubr.bf16.mxu0 %v3095_v0  ;;  %1011 = vmatprep.mubr.bf16.mxu1 %v3095_v0 }
  0x3a   :  { %152 = vperm.xlu1 %2078, %v41_v37  }
  0x3b   :  { %941 = vmatpush1.bf16.msra.mxu0 %v2361_v8  ;;  %982 = vmatpush1.bf16.msra.mxu1 %v2364_v9 }
  0x3c   :  { %942 = vmatprep.subr.bf16.mxu0 %v2367_v10  ;;  %983 = vmatprep.subr.bf16.mxu1 %v2369_v11 }
  0x3e   :  { %2079 = vset.pattern.permute.xlu1 %v3095_v0 }
  0x3f   :  { %943 = vmatpush1.bf16.msra.mxu0 %v2371_v12  ;;  %984 = vmatpush1.bf16.msra.mxu1 %v2373_v13 }
  0x40   :  { %944 = vmatprep.subr.bf16.mxu0 %v2377_v14  ;;  %985 = vmatprep.subr.bf16.mxu1 %v2381_v15 }
  0x43   :  { %945 = vmatpush1.bf16.msra.mxu0 %v2383_v16  ;;  %986 = vmatpush1.bf16.msra.mxu1 %v2387_v17 }
  0x44   :  { %946 = vmatprep.subr.bf16.mxu0 %v2389_v18  ;;  %987 = vmatprep.subr.bf16.mxu1 %v2393_v19 }
  0x47   :  { %947 = vmatpush1.bf16.msra.mxu0 %v2395_v20  ;;  %988 = vmatpush1.bf16.msra.mxu1 %v2397_v21 }
  0x48   :  { %948 = vmatprep.subr.bf16.mxu0 %v2401_v22  ;;  %989 = vmatprep.subr.bf16.mxu1 %v2405_v23 }
  0x4b   :  { %949 = vmatpush1.bf16.msra.mxu0 %v2409_v24  ;;  %990 = vmatpush1.bf16.msra.mxu1 %v2411_v25 }
  0x4c   :  { %950 = vmatprep.subr.bf16.mxu0 %v2415_v26  ;;  %991 = vmatprep.subr.bf16.mxu1 %v2417_v27 }
  0x4f   :  { %951 = vmatpush1.bf16.msra.mxu0 %v2424_v29  ;;  %992 = vmatpush1.bf16.msra.mxu1 %v2426_v30 }
  0x50   :  { %952 = vmatprep.subr.bf16.mxu0 %v2430_v31  ;;  %993 = vmatprep.subr.bf16.mxu1 %v2432_v32 }
  0x53   :  { %953 = vmatpush1.bf16.msra.mxu0 %v2438_v34  ;;  %994 = vmatpush1.bf16.msra.mxu1 %v2440_v35 }
  0x54   :  { %1066 = vmatprep.subr.bf16.mxu0 %v2345_v2  ;;  %1107 = vmatprep.subr.bf16.mxu1 %v2347_v3 }
  0x9d   :  { %v51_v44 = vpop.permute.xlu0 %50  ;;  %v264_v46 = vpop.permute.xlu1 %263 }
  0x9e   :  { %v109_v61 = vmul.f32 %v2502_v47, %v51_v44  ;;  %v110_v62 = vmul.f32 %v2504_v48, %v51_v44  ;;  %v111_v63 = vmul.f32 %v2506_v49, %v51_v44  ;;  %v112_v28 = vmul.f32 %v2508_v50, %v51_v44 }
  0x9f   :  { %v315_v51 = vmul.f32 %v2521_v57, %v264_v46  ;;  %v316_v33 = vmul.f32 %v2523_v58, %v264_v46  ;;  %v317_v1 = vmul.f32 %v2525_v59, %v264_v46  ;;  %v318_v0 = vmul.f32 %v2527_v60, %v264_v46 }
  0xa4   :  { %v145_v56 = vpop.permute.xlu0 %144 }
  0xa5   :  { %v196_v36 = vmul.f32 %v2513_v52, %v145_v56  ;;  %v197_v37 = vmul.f32 %v2515_v53, %v145_v56  ;;  %v198_v38 = vmul.f32 %v2517_v54, %v145_v56  ;;  %v199_v45 = vmul.f32 %v2519_v55, %v145_v56  ;;  %v379_v53 = vld [vmem:[%s3086_s2] sm:$0xf] }
  0xa6   :  { %v2289_v54 = vmov 1983009808   ;;  %v2544_v56 = vrot.slane %v379_v53, %v91_v40  ;;  %v2546_v55 = vrot.slane %v379_v53, %v95_v41  ;;  %v2548_v57 = vrot.slane %v379_v53, %v99_v42 }
  0xa7   :  { %v228_v49 = vadd.f32 %v196_v36, %v109_v61  ;;  %v229_v48 = vadd.f32 %v197_v37, %v110_v62  ;;  %v230_v44 = vadd.f32 %v198_v38, %v111_v63  ;;  %v231_v50 = vadd.f32 %v199_v45, %v112_v28 }
  0xa8   :  { %v468_v52 = vunpack.c.l.s4 %v2289_v54  ;;  %v2550_v58 = vrot.slane %v379_v53, %v103_v43 }
  0xa9   :  { %v347_v59 = vadd.f32 %v315_v51, %v228_v49  ;;  %v348_v46 = vadd.f32 %v316_v33, %v229_v48  ;;  %v349_v61 = vadd.f32 %v317_v1, %v230_v44  ;;  %v350_v62 = vadd.f32 %v318_v0, %v231_v50 }
  0xaa   :  { %v469_v63 = vunpack.c.0.s8 %v468_v52 }
  0xab   :  { %v401_v28 = vadd.f32 %v2544_v56, %v347_v59  ;;  %v402_v36 = vadd.f32 %v2546_v55, %v348_v46  ;;  %v403_v37 = vadd.f32 %v2548_v57, %v349_v61  ;;  %v404_v40 = vadd.f32 %v2550_v58, %v350_v62 }
  0xac   :  { %v2556_v54 = vsub.s32 %v469_v63, %v90_v39 }
  0xad   :  { %v465_v41 = vcombine.low %v401_v28, %v402_v36  ;;  %v466_v42 = vcombine.low %v403_v37, %v404_v40 }
  0xaf   :  { %v473_v0 = vrot.slane %v465_v41, %v2556_v54  ;;  %v480_v1 = vrot.slane %v466_v42, %v2556_v54 }
  0xb1   :  { %v481_v44 = vcombine.low %v473_v0, %v480_v1  ;;  %v3152_v1 = vmov 0  }
 0x109   :  { %v844_v38 = vpop.f32.mrb[0].mxu0  ;;  %v885_v43 = vpop.f32.mrb[0].mxu1 }
 0x10a   :  { %v846_v53 = vpop.f32.mrb[1].mxu0  ;;  %v887_v49 = vpop.f32.mrb[1].mxu1 }
 0x10b   :  { %v896_v33 = vcombine.low %v844_v38, %v846_v53  ;;  %v897_v48 = vcombine.low %v885_v43, %v887_v49  ;;  %v848_v50 = vpop.f32.mrb[2].mxu0  ;;  %v889_v52 = vpop.f32.mrb[2].mxu1 }
 0x10c   :  { %v849_v59 = vpop.f32.mrb[3].mxu0  ;;  %v890_v45 = vpop.f32.mrb[3].mxu1  ;;  %v3153_v52 = vld [vmem:[#allocation14_spill] sm:$0xff] }
 0x10d   :  { %v904_v51 = vrot.slane %v896_v33, %v2556_v54  ;;  %v911_v39 = vrot.slane %v897_v48, %v2556_v54  ;;  %v56_v48 = vpop.permute.xlu1 %55  ;;  %v3154_v45 = vld [vmem:[#allocation15_spill] sm:$0xff] }
 0x10e   :  { %v113_v50 = vmul.f32 %v2502_v47, %v56_v48  ;;  %v114_v59 = vmul.f32 %v3153_v52, %v56_v48 }
 0x10f   :  { %v912_v46 = vcombine.low %v904_v51, %v911_v39  ;;  %v115_v51 = vmul.f32 %v3154_v45, %v56_v48  ;;  %v3155_v39 = vld [vmem:[#allocation16_spill] sm:$0xff] }
 0x111   :  { %v914_v61 = vadd.f32 %v912_v46, %v481_v44  ;;  %v116_v44 = vmul.f32 %v3155_v39, %v56_v48  ;;  %v149_v46 = vpop.permute.xlu1 %148 }
 0x113   :  { %v1975_v62 = vmul.f32 -1.442695, %v914_v61  ;;  %v922_v36 = vrot.slane %v914_v61, 6  ;;  %v3156_v61 = vld [vmem:[#allocation17_spill] sm:$0xff] }
 0x115   :  { %2139 = vpow2.f32 %v1975_v62  ;;  %v200_v62 = vmul.f32 %v3156_v61, %v149_v46 }
 0x117   :  { %v232_v47 = vadd.f32 %v200_v62, %v113_v50 }
 0x11f   :  { %v2140_v63 = vpop.eup %2139 }
 0x120   :  { %v918_v28 = vadd.f32 1.0, %v2140_v63  ;;  %v3157_v63 = vld [vmem:[#allocation18_spill] sm:$0xff] }
 0x122   :  { %2141 = vrcp.f32 %v918_v28  ;;  %v201_v28 = vmul.f32 %v3157_v63, %v149_v46 }
 0x123   :  { %2143 = vtanh.f32 %v922_v36  ;;  %v3158_v36 = vld [vmem:[#allocation19_spill] sm:$0xff] }
 0x124   :  { %v233_v48 = vadd.f32 %v201_v28, %v114_v59 }
 0x12c   :  { %v2142_v37 = vpop.eup %2141 }
 0x12d   :  { %v926_v40 = vrot.slane %v2142_v37, 2  ;;  %v2144_v41 = vpop.eup %2143  ;;  %v932_v53 = vrot.slane %v2142_v37, 4 }
 0x12e   :  { %v929_v42 = vmul.f32 %v2144_v41, %v2142_v37  ;;  %v202_v37 = vmul.f32 %v3158_v36, %v149_v46 }
 0x12f   :  { %v928_v38 = vmul.f32 0.0, %v926_v40  ;;  %v3159_v40 = vld [vmem:[#allocation20_spill] sm:$0xff] }
 0x130   :  { %v203_v41 = vmul.f32 %v3159_v40, %v149_v46  ;;  %v234_v39 = vadd.f32 %v202_v37, %v115_v51 }
 0x131   :  { %v2562_v43 = vadd.f32 %v929_v42, %v928_v38  ;;  %v268_v42 = vpop.permute.xlu0 %267  ;;  %v3160_v38 = vld [vmem:[#allocation21_spill] sm:$0xff] }
 0x132   :  { %v322_v45 = vmul.f32 %v2527_v60, %v268_v42 }
 0x133   :  { %2145 = vtanh.f32 %v2562_v43 }
 0x13d   :  { %v2146_v49 = vpop.eup %2145 }
 0x13e   :  { %v934_v33 = vmul.f32 %v2146_v49, %v932_v53  ;;  %v319_v53 = vmul.f32 %v3160_v38, %v268_v42  ;;  %v3161_v49 = vld [vmem:[#allocation22_spill] sm:$0xff] }
 0x140   :  { %v937_v0 = vpack.c.bf16 %v934_v33, %v934_v33  ;;  %v320_v33 = vmul.f32 %v3161_v49, %v268_v42  ;;  %v351_v61 = vadd.f32 %v319_v53, %v232_v47 }
 0x142   :  { %971 = vmatmul.mubr.bf16.vlgmr.msra.gmra.mrb[4].mxu0 %v937_v0  ;;  %1012 = vmatmul.mubr.bf16.vlgmr.msra.gmra.mrb[4].mxu1 %v937_v0  ;;  %v3162_v0 = vld [vmem:[#allocation23_spill] sm:$0xff]  ;;  %v405_v36 = vadd.f32 %v2544_v56, %v351_v61 }
 0x143   :  { %1067 = vmatpush1.bf16.msra.mxu0 %v2350_v4  ;;  %1108 = vmatpush1.bf16.msra.mxu1 %v2352_v5  ;;  %v321_v52 = vmul.f32 %v3162_v0, %v268_v42 }
 0x144   :  { %1068 = vmatprep.subr.bf16.mxu0 %v2355_v6  ;;  %1109 = vmatprep.subr.bf16.mxu1 %v2359_v7 }
 0x145   :  { %1098 = vmatprep.mubr.bf16.mxu0 %v3152_v1  ;;  %1139 = vmatprep.mubr.bf16.mxu1 %v3152_v1  ;;  %v353_v63 = vadd.f32 %v321_v52, %v234_v39 }
 0x147   :  { %1069 = vmatpush1.bf16.msra.mxu0 %v2361_v8  ;;  %1110 = vmatpush1.bf16.msra.mxu1 %v2364_v9  ;;  %v407_v38 = vadd.f32 %v2548_v57, %v353_v63 }
 0x148   :  { %1070 = vmatprep.subr.bf16.mxu0 %v2367_v10  ;;  %1111 = vmatprep.subr.bf16.mxu1 %v2369_v11 }
 0x14b   :  { %1071 = vmatpush1.bf16.msra.mxu0 %v2371_v12  ;;  %1112 = vmatpush1.bf16.msra.mxu1 %v2373_v13 }
 0x14c   :  { %1072 = vmatprep.subr.bf16.mxu0 %v2377_v14  ;;  %1113 = vmatprep.subr.bf16.mxu1 %v2381_v15 }
 0x14f   :  { %1073 = vmatpush1.bf16.msra.mxu0 %v2383_v16  ;;  %1114 = vmatpush1.bf16.msra.mxu1 %v2387_v17 }
 0x150   :  { %1074 = vmatprep.subr.bf16.mxu0 %v2389_v18  ;;  %1115 = vmatprep.subr.bf16.mxu1 %v2393_v19 }
 0x153   :  { %1075 = vmatpush1.bf16.msra.mxu0 %v2395_v20  ;;  %1116 = vmatpush1.bf16.msra.mxu1 %v2397_v21 }
 0x154   :  { %1076 = vmatprep.subr.bf16.mxu0 %v2401_v22  ;;  %1117 = vmatprep.subr.bf16.mxu1 %v2405_v23 }
 0x157   :  { %1077 = vmatpush1.bf16.msra.mxu0 %v2409_v24  ;;  %1118 = vmatpush1.bf16.msra.mxu1 %v2411_v25 }
 0x158   :  { %1078 = vmatprep.subr.bf16.mxu0 %v2415_v26  ;;  %1119 = vmatprep.subr.bf16.mxu1 %v2417_v27 }
 0x15b   :  { %1079 = vmatpush1.bf16.msra.mxu0 %v2424_v29  ;;  %1120 = vmatpush1.bf16.msra.mxu1 %v2426_v30 }
 0x15c   :  { %1080 = vmatprep.subr.bf16.mxu0 %v2430_v31  ;;  %1121 = vmatprep.subr.bf16.mxu1 %v2432_v32 }
 0x15f   :  { %1081 = vmatpush1.bf16.msra.mxu0 %v2438_v34  ;;  %1122 = vmatpush1.bf16.msra.mxu1 %v2440_v35 }
 0x160   :  { %1194 = vmatprep.subr.bf16.mxu0 %v2345_v2  ;;  %1235 = vmatprep.subr.bf16.mxu1 %v2347_v3  ;;  %v235_v3 = vadd.f32 %v203_v41, %v116_v44  ;;  %v352_v2 = vadd.f32 %v320_v33, %v233_v48 }
 0x162   :  { %v354_v35 = vadd.f32 %v322_v45, %v235_v3  ;;  %v406_v46 = vadd.f32 %v2546_v55, %v352_v2 }
 0x164   :  { %v408_v49 = vadd.f32 %v2550_v58, %v354_v35  ;;  %v482_v40 = vcombine.low %v405_v36, %v406_v46 }
 0x166   :  { %v483_v0 = vcombine.low %v407_v38, %v408_v49  ;;  %v490_v47 = vrot.slane %v482_v40, %v2556_v54 }
 0x168   :  { %v497_v52 = vrot.slane %v483_v0, %v2556_v54 }
 0x16a   :  { %v498_v62 = vcombine.low %v490_v47, %v497_v52  ;;  %v3166_v47 = vld [vmem:[#allocation10_spill] sm:$0xff]  ;;  %v42_v52 = vld [vmem:[%s3084_s0 + $0x6] sm:$0x3] }
 0x16b   :  { %65 = vperm.xlu1 %2079, %v42_v52   ;;  %156 = vperm.xlu0 %2080, %v42_v52  }
 0x215   :  { %v972_v34 = vpop.f32.mrb[4].mxu0  ;;  %v1013_v42 = vpop.f32.mrb[4].mxu1 }
 0x216   :  { %v974_v50 = vpop.f32.mrb[5].mxu0  ;;  %v1015_v59 = vpop.f32.mrb[5].mxu1 }
 0x217   :  { %v1024_v51 = vcombine.low %v972_v34, %v974_v50  ;;  %v1025_v3 = vcombine.low %v1013_v42, %v1015_v59  ;;  %v976_v45 = vpop.f32.mrb[6].mxu0  ;;  %v1017_v39 = vpop.f32.mrb[6].mxu1  ;;  %v3164_v59 = vld [vmem:[#allocation12_spill] sm:$0xff] }
 0x218   :  { %v977_v44 = vpop.f32.mrb[7].mxu0  ;;  %v1018_v2 = vpop.f32.mrb[7].mxu1  ;;  %v3167_v45 = vmov 2   ;;  %v3168_v39 = vmov 1  }
 0x219   :  { %v1032_v61 = vrot.slane %v1024_v51, %v2556_v54  ;;  %v1039_v35 = vrot.slane %v1025_v3, %v2556_v54  ;;  %v3165_v51 = vld [vmem:[#allocation9_spill] sm:$0xff]  ;;  %v43_v3 = vld [vmem:[%s3084_s0 + $0x8] sm:$0x3]  ;;  %2081 = vset.pattern.permute.xlu1 %v3167_v45  ;;  %v61_v44 = vpop.permute.xlu1 %60 }
 0x21a   :  { %160 = vperm.xlu0 %2080, %v43_v3   ;;  %275 = vperm.xlu1 %2081, %v42_v52  }
 0x21b   :  { %v1040_v63 = vcombine.low %v1032_v61, %v1039_v35  ;;  %v3169_v61 = vld [vmem:[#allocation13_spill] sm:$0xff] }
 0x21c   :  { %v117_v35 = vmul.f32 %v3169_v61, %v61_v44 }
 0x21d   :  { %v1042_v28 = vadd.f32 %v1040_v63, %v498_v62  ;;  %v153_v2 = vpop.permute.xlu1 %152  ;;  %v3170_v62 = vld [vmem:[#allocation14_spill] sm:$0xff] }
 0x21e   :  { %2084 = vset.pattern.permute.xlu0 %v3152_v1  ;;  %2082 = vset.pattern.permute.xlu1 %v3152_v1  ;;  %v118_v63 = vmul.f32 %v3170_v62, %v61_v44 }
 0x21f   :  { %v1976_v36 = vmul.f32 -1.442695, %v1042_v28  ;;  %v1050_v41 = vrot.slane %v1042_v28, 6  ;;  %70 = vperm.xlu1 %2082, %v43_v3   ;;  %v3171_v28 = vld [vmem:[#allocation15_spill] sm:$0xff] }
 0x221   :  { %2147 = vpow2.f32 %v1976_v36  ;;  %v119_v36 = vmul.f32 %v3171_v28, %v61_v44 }
 0x223   :  { %2083 = vset.pattern.permute.xlu1 %v3167_v45  ;;  %v3179_v45 = vld [vmem:[#allocation23_spill] sm:$0xff] }
 0x224   :  { %279 = vperm.xlu1 %2083, %v43_v3   ;;  %v3178_v3 = vld [vmem:[#allocation22_spill] sm:$0xff] }
 0x228   :  { %2085 = vset.pattern.permute.xlu1 %v3168_v39 }
 0x22b   :  { %v2148_v37 = vpop.eup %2147 }
 0x22c   :  { %v1046_v34 = vadd.f32 1.0, %v2148_v37  ;;  %v3172_v37 = vld [vmem:[#allocation16_spill] sm:$0xff] }
 0x22e   :  { %2149 = vrcp.f32 %v1046_v34  ;;  %v120_v34 = vmul.f32 %v3172_v37, %v61_v44 }
 0x22f   :  { %2151 = vtanh.f32 %v1050_v41  ;;  %v3173_v41 = vld [vmem:[#allocation17_spill] sm:$0xff] }
 0x238   :  { %v2150_v40 = vpop.eup %2149 }
 0x239   :  { %v1054_v38 = vrot.slane %v2150_v40, 2  ;;  %v2152_v53 = vpop.eup %2151  ;;  %v1060_v48 = vrot.slane %v2150_v40, 4 }
 0x23a   :  { %v1057_v49 = vmul.f32 %v2152_v53, %v2150_v40  ;;  %v204_v40 = vmul.f32 %v3173_v41, %v153_v2 }
 0x23b   :  { %v1056_v33 = vmul.f32 %v1054_v38, %v2562_v43  ;;  %v3163_v43 = vld [vmem:[#allocation11_spill] sm:$0xff]  ;;  %v3174_v38 = vld [vmem:[#allocation18_spill] sm:$0xff] }
 0x23c   :  { %v205_v53 = vmul.f32 %v3174_v38, %v153_v2  ;;  %v236_v28 = vadd.f32 %v204_v40, %v117_v35 }
 0x23d   :  { %v2620_v0 = vadd.f32 %v1057_v49, %v1056_v33  ;;  %v3175_v49 = vld [vmem:[#allocation19_spill] sm:$0xff] }
 0x23e   :  { %v206_v33 = vmul.f32 %v3175_v49, %v153_v2 }
 0x23f   :  { %2153 = vtanh.f32 %v2620_v0 }
 0x240   :  { %v238_v44 = vadd.f32 %v206_v33, %v119_v36 }
 0x249   :  { %v2154_v46 = vpop.eup %2153 }
 0x24a   :  { %v1062_v42 = vmul.f32 %v2154_v46, %v1060_v48  ;;  %v3176_v48 = vld [vmem:[#allocation20_spill] sm:$0xff] }
 0x24b   :  { %v207_v46 = vmul.f32 %v3176_v48, %v153_v2 }
 0x24c   :  { %v1065_v50 = vpack.c.bf16 %v1062_v42, %v1062_v42  ;;  %v272_v42 = vpop.permute.xlu0 %271 }
 0x24d   :  { %v324_v39 = vmul.f32 %v3178_v3, %v272_v42  ;;  %v325_v61 = vmul.f32 %v3179_v45, %v272_v42  ;;  %v326_v62 = vmul.f32 %v2527_v60, %v272_v42  ;;  %v239_v37 = vadd.f32 %v207_v46, %v120_v34 }
 0x24e   :  { %1099 = vmatmul.mubr.bf16.vlgmr.msra.gmra.mrb[8].mxu0 %v1065_v50  ;;  %1140 = vmatmul.mubr.bf16.vlgmr.msra.gmra.mrb[8].mxu1 %v1065_v50  ;;  %v3177_v50 = vld [vmem:[#allocation21_spill] sm:$0xff] }
 0x24f   :  { %1195 = vmatpush1.bf16.msra.mxu0 %v2350_v4  ;;  %1236 = vmatpush1.bf16.msra.mxu1 %v2352_v5  ;;  %v323_v52 = vmul.f32 %v3177_v50, %v272_v42  ;;  %v357_v38 = vadd.f32 %v325_v61, %v238_v44 }
 0x250   :  { %1196 = vmatprep.subr.bf16.mxu0 %v2355_v6  ;;  %1237 = vmatprep.subr.bf16.mxu1 %v2359_v7 }
 0x251   :  { %1226 = vmatprep.mubr.bf16.mxu0 %v3152_v1  ;;  %1267 = vmatprep.mubr.bf16.mxu1 %v3152_v1  ;;  %v355_v41 = vadd.f32 %v323_v52, %v236_v28  ;;  %v411_v50 = vadd.f32 %v2548_v57, %v357_v38 }
 0x253   :  { %1197 = vmatpush1.bf16.msra.mxu0 %v2361_v8  ;;  %1238 = vmatpush1.bf16.msra.mxu1 %v2364_v9  ;;  %v409_v49 = vadd.f32 %v2544_v56, %v355_v41 }
 0x254   :  { %1198 = vmatprep.subr.bf16.mxu0 %v2367_v10  ;;  %1239 = vmatprep.subr.bf16.mxu1 %v2369_v11 }
 0x257   :  { %1199 = vmatpush1.bf16.msra.mxu0 %v2371_v12  ;;  %1240 = vmatpush1.bf16.msra.mxu1 %v2373_v13 }
 0x258   :  { %1200 = vmatprep.subr.bf16.mxu0 %v2377_v14  ;;  %1241 = vmatprep.subr.bf16.mxu1 %v2381_v15 }
 0x25b   :  { %1201 = vmatpush1.bf16.msra.mxu0 %v2383_v16  ;;  %1242 = vmatpush1.bf16.msra.mxu1 %v2387_v17 }
 0x25c   :  { %1202 = vmatprep.subr.bf16.mxu0 %v2389_v18  ;;  %1243 = vmatprep.subr.bf16.mxu1 %v2393_v19 }
 0x25f   :  { %1203 = vmatpush1.bf16.msra.mxu0 %v2395_v20  ;;  %1244 = vmatpush1.bf16.msra.mxu1 %v2397_v21 }
 0x260   :  { %1204 = vmatprep.subr.bf16.mxu0 %v2401_v22  ;;  %1245 = vmatprep.subr.bf16.mxu1 %v2405_v23 }
 0x263   :  { %1205 = vmatpush1.bf16.msra.mxu0 %v2409_v24  ;;  %1246 = vmatpush1.bf16.msra.mxu1 %v2411_v25 }
 0x264   :  { %1206 = vmatprep.subr.bf16.mxu0 %v2415_v26  ;;  %1247 = vmatprep.subr.bf16.mxu1 %v2417_v27 }
 0x267   :  { %1207 = vmatpush1.bf16.msra.mxu0 %v2424_v29  ;;  %1248 = vmatpush1.bf16.msra.mxu1 %v2426_v30 }
 0x268   :  { %1208 = vmatprep.subr.bf16.mxu0 %v2430_v31  ;;  %1249 = vmatprep.subr.bf16.mxu1 %v2432_v32 }
 0x26b   :  { %1209 = vmatpush1.bf16.msra.mxu0 %v3163_v43  ;;  %1250 = vmatpush1.bf16.msra.mxu1 %v3164_v59  ;;  %v358_v59 = vadd.f32 %v326_v62, %v239_v37 }
 0x26c   :  { %1322 = vmatprep.subr.bf16.mxu0 %v3165_v51  ;;  %1363 = vmatprep.subr.bf16.mxu1 %v3166_v47  ;;  %v237_v47 = vadd.f32 %v205_v53, %v118_v63 }
 0x26d   :  { %v412_v3 = vadd.f32 %v2550_v58, %v358_v59 }
 0x26e   :  { %v356_v51 = vadd.f32 %v324_v39, %v237_v47 }
 0x26f   :  { %v500_v45 = vcombine.low %v411_v50, %v412_v3 }
 0x270   :  { %v410_v2 = vadd.f32 %v2546_v55, %v356_v51 }
 0x271   :  { %v514_v47 = vrot.slane %v500_v45, %v2556_v54 }
 0x272   :  { %v499_v48 = vcombine.low %v409_v49, %v410_v2 }
 0x274   :  { %v507_v28 = vrot.slane %v499_v48, %v2556_v54 }
 0x276   :  { %v515_v41 = vcombine.low %v507_v28, %v514_v47 }
 0x321   :  { %v1100_v43 = vpop.f32.mrb[8].mxu0  ;;  %v1141_v42 = vpop.f32.mrb[8].mxu1 }
 0x322   :  { %v1102_v35 = vpop.f32.mrb[9].mxu0  ;;  %v1143_v63 = vpop.f32.mrb[9].mxu1 }
 0x323   :  { %v1152_v36 = vcombine.low %v1100_v43, %v1102_v35  ;;  %v1153_v39 = vcombine.low %v1141_v42, %v1143_v63  ;;  %v1104_v61 = vpop.f32.mrb[10].mxu0  ;;  %v1145_v62 = vpop.f32.mrb[10].mxu1 }
 0x324   :  { %v1105_v37 = vpop.f32.mrb[11].mxu0  ;;  %v1146_v51 = vpop.f32.mrb[11].mxu1  ;;  %v3193_v62 = vld [vmem:[#allocation22_spill] sm:$0xff] }
 0x325   :  { %v1160_v34 = vrot.slane %v1152_v36, %v2556_v54  ;;  %v1167_v59 = vrot.slane %v1153_v39, %v2556_v54  ;;  %v3192_v39 = vld [vmem:[#allocation21_spill] sm:$0xff]  ;;  %v3194_v51 = vld [vmem:[#allocation23_spill] sm:$0xff] }
 0x327   :  { %v1168_v40 = vcombine.low %v1160_v34, %v1167_v59 }
 0x329   :  { %v1170_v38 = vadd.f32 %v1168_v40, %v515_v41 }
 0x32b   :  { %v1977_v53 = vmul.f32 -1.442695, %v1170_v38  ;;  %v1178_v33 = vrot.slane %v1170_v38, 6 }
 0x32d   :  { %2155 = vpow2.f32 %v1977_v53 }
 0x337   :  { %v2156_v49 = vpop.eup %2155 }
 0x338   :  { %v1174_v43 = vadd.f32 1.0, %v2156_v49 }
 0x33a   :  { %2157 = vrcp.f32 %v1174_v43 }
 0x33b   :  { %2159 = vtanh.f32 %v1178_v33 }
 0x344   :  { %v2158_v45 = vpop.eup %2157 }
 0x345   :  { %v1182_v48 = vrot.slane %v2158_v45, 2  ;;  %v2160_v46 = vpop.eup %2159  ;;  %v1188_v44 = vrot.slane %v2158_v45, 4 }
 0x346   :  { %v1185_v50 = vmul.f32 %v2160_v46, %v2158_v45 }
 0x347   :  { %v1184_v52 = vmul.f32 %v1182_v48, %v2620_v0 }
 0x349   :  { %v2689_v3 = vadd.f32 %v1185_v50, %v1184_v52 }
 0x34b   :  { %2161 = vtanh.f32 %v2689_v3 }
 0x355   :  { %v2162_v2 = vpop.eup %2161 }
 0x356   :  { %v1190_v42 = vmul.f32 %v2162_v2, %v1188_v44 }
 0x358   :  { %v1193_v35 = vpack.c.bf16 %v1190_v42, %v1190_v42 }
 0x35a   :  { %1227 = vmatmul.mubr.bf16.vlgmr.msra.gmra.mrb[12].mxu0 %v1193_v35  ;;  %1268 = vmatmul.mubr.bf16.vlgmr.msra.gmra.mrb[12].mxu1 %v1193_v35 }
 0x35b   :  { %1323 = vmatpush1.bf16.msra.mxu0 %v2350_v4  ;;  %1364 = vmatpush1.bf16.msra.mxu1 %v2352_v5  ;;  %v3180_v4 = vld [vmem:[#allocation11_spill] sm:$0xff]  ;;  %v3181_v5 = vld [vmem:[#allocation12_spill] sm:$0xff] }
 0x35c   :  { %1324 = vmatprep.subr.bf16.mxu0 %v2355_v6  ;;  %1365 = vmatprep.subr.bf16.mxu1 %v2359_v7  ;;  %v3182_v6 = vld [vmem:[#allocation9_spill] sm:$0xff]  ;;  %v3183_v7 = vld [vmem:[#allocation10_spill] sm:$0xff] }
 0x35d   :  { %1354 = vmatprep.mubr.bf16.mxu0 %v3152_v1  ;;  %1395 = vmatprep.mubr.bf16.mxu1 %v3152_v1 }
 0x35f   :  { %1325 = vmatpush1.bf16.msra.mxu0 %v2361_v8  ;;  %1366 = vmatpush1.bf16.msra.mxu1 %v2364_v9  ;;  %v157_v8 = vpop.permute.xlu0 %156  ;;  %v66_v9 = vpop.permute.xlu1 %65 }
 0x360   :  { %1326 = vmatprep.subr.bf16.mxu0 %v2367_v10  ;;  %1367 = vmatprep.subr.bf16.mxu1 %v2369_v11  ;;  %v3184_v10 = vld [vmem:[#allocation13_spill] sm:$0xff] }
 0x361   :  { %v121_v11 = vmul.f32 %v3184_v10, %v66_v9 }
 0x363   :  { %1327 = vmatpush1.bf16.msra.mxu0 %v2371_v12  ;;  %1368 = vmatpush1.bf16.msra.mxu1 %v2373_v13  ;;  %v3185_v12 = vld [vmem:[#allocation14_spill] sm:$0xff]  ;;  %v276_v0 = vpop.permute.xlu1 %275 }
 0x364   :  { %1328 = vmatprep.subr.bf16.mxu0 %v2377_v14  ;;  %1369 = vmatprep.subr.bf16.mxu1 %v2381_v15  ;;  %v122_v13 = vmul.f32 %v3185_v12, %v66_v9  ;;  %v3186_v14 = vld [vmem:[#allocation15_spill] sm:$0xff]  ;;  %v327_v61 = vmul.f32 %v3192_v39, %v276_v0  ;;  %v328_v37 = vmul.f32 %v3193_v62, %v276_v0 }
 0x365   :  { %v123_v15 = vmul.f32 %v3186_v14, %v66_v9  ;;  %v329_v34 = vmul.f32 %v3194_v51, %v276_v0  ;;  %v330_v59 = vmul.f32 %v2527_v60, %v276_v0 }
 0x367   :  { %1329 = vmatpush1.bf16.msra.mxu0 %v2383_v16  ;;  %1370 = vmatpush1.bf16.msra.mxu1 %v2387_v17  ;;  %v3187_v16 = vld [vmem:[#allocation16_spill] sm:$0xff] }
 0x368   :  { %1330 = vmatprep.subr.bf16.mxu0 %v2389_v18  ;;  %1371 = vmatprep.subr.bf16.mxu1 %v2393_v19  ;;  %v124_v17 = vmul.f32 %v3187_v16, %v66_v9  ;;  %v3188_v18 = vld [vmem:[#allocation17_spill] sm:$0xff] }
 0x369   :  { %v208_v19 = vmul.f32 %v3188_v18, %v157_v8 }
 0x36b   :  { %1331 = vmatpush1.bf16.msra.mxu0 %v2395_v20  ;;  %1372 = vmatpush1.bf16.msra.mxu1 %v2397_v21  ;;  %v3189_v20 = vld [vmem:[#allocation18_spill] sm:$0xff]  ;;  %v240_v63 = vadd.f32 %v208_v19, %v121_v11 }
 0x36c   :  { %1332 = vmatprep.subr.bf16.mxu0 %v2401_v22  ;;  %1373 = vmatprep.subr.bf16.mxu1 %v2405_v23  ;;  %v209_v21 = vmul.f32 %v3189_v20, %v157_v8  ;;  %v3190_v22 = vld [vmem:[#allocation19_spill] sm:$0xff] }
 0x36d   :  { %v210_v23 = vmul.f32 %v3190_v22, %v157_v8  ;;  %v359_v41 = vadd.f32 %v327_v61, %v240_v63 }
 0x36e   :  { %v241_v36 = vadd.f32 %v209_v21, %v122_v13 }
 0x36f   :  { %1333 = vmatpush1.bf16.msra.mxu0 %v2409_v24  ;;  %1374 = vmatpush1.bf16.msra.mxu1 %v2411_v25  ;;  %v3191_v24 = vld [vmem:[#allocation20_spill] sm:$0xff]  ;;  %v242_v28 = vadd.f32 %v210_v23, %v123_v15  ;;  %v413_v49 = vadd.f32 %v2544_v56, %v359_v41 }
 0x370   :  { %1334 = vmatprep.subr.bf16.mxu0 %v2415_v26  ;;  %1375 = vmatprep.subr.bf16.mxu1 %v2417_v27  ;;  %v211_v25 = vmul.f32 %v3191_v24, %v157_v8  ;;  %v360_v40 = vadd.f32 %v328_v37, %v241_v36 }
 0x371   :  { %v361_v38 = vadd.f32 %v329_v34, %v242_v28 }
 0x372   :  { %v243_v47 = vadd.f32 %v211_v25, %v124_v17  ;;  %v414_v43 = vadd.f32 %v2546_v55, %v360_v40 }
 0x373   :  { %1335 = vmatpush1.bf16.msra.mxu0 %v2424_v29  ;;  %1376 = vmatpush1.bf16.msra.mxu1 %v2426_v30  ;;  %v415_v33 = vadd.f32 %v2548_v57, %v361_v38 }
 0x374   :  { %1336 = vmatprep.subr.bf16.mxu0 %v2430_v31  ;;  %1377 = vmatprep.subr.bf16.mxu1 %v2432_v32  ;;  %v362_v53 = vadd.f32 %v330_v59, %v243_v47  ;;  %v516_v48 = vcombine.low %v413_v49, %v414_v43  ;;  %v2750_v49 = vld [vmem:[#allocation3] ss:$16 sps:$4 sm:$0xff]   ;;  %v2753_v43 = vld [vmem:[#allocation3 + $0x8] ss:$16 sps:$4 sm:$0xff]  }
 0x376   :  { %v416_v45 = vadd.f32 %v2550_v58, %v362_v53  ;;  %v524_v35 = vrot.slane %v516_v48, %v2556_v54  ;;  %v2767_v48 = vld [vmem:[#allocation3 + $0x28] ss:$16 sps:$4 sm:$0xff]  }
 0x377   :  { %1337 = vmatpush1.bf16.msra.mxu0 %v3180_v4  ;;  %1378 = vmatpush1.bf16.msra.mxu1 %v3181_v5 }
 0x378   :  { %1450 = vmatprep.subr.bf16.mxu0 %v3182_v6  ;;  %1491 = vmatprep.subr.bf16.mxu1 %v3183_v7  ;;  %v517_v46 = vcombine.low %v415_v33, %v416_v45  ;;  %v2756_v33 = vld [vmem:[#allocation3 + $0x24] ss:$16 sps:$4 sm:$0xff]   ;;  %v2764_v45 = vld [vmem:[#allocation3 + $0x20] ss:$16 sps:$4 sm:$0xff]  }
 0x37a   :  { %v531_v6 = vrot.slane %v517_v46, %v2556_v54  ;;  %v2770_v46 = vld [vmem:[#allocation3 + $0x44] ss:$16 sps:$4 sm:$0xff]  }
 0x37c   :  { %v532_v19 = vcombine.low %v524_v35, %v531_v6  ;;  %v2788_v35 = vld [vmem:[#allocation3 + $0x60] ss:$16 sps:$4 sm:$0xff]   ;;  %v2791_v6 = vld [vmem:[#allocation3 + $0x68] ss:$16 sps:$4 sm:$0xff]  }
 0x42d   :  { %v1228_v50 = vpop.f32.mrb[12].mxu0  ;;  %v1269_v52 = vpop.f32.mrb[12].mxu1 }
 0x42e   :  { %v1230_v44 = vpop.f32.mrb[13].mxu0  ;;  %v1271_v2 = vpop.f32.mrb[13].mxu1 }
 0x42f   :  { %v1280_v42 = vcombine.low %v1228_v50, %v1230_v44  ;;  %v1281_v7 = vcombine.low %v1269_v52, %v1271_v2  ;;  %v1232_v8 = vpop.f32.mrb[14].mxu0  ;;  %v1273_v9 = vpop.f32.mrb[14].mxu1  ;;  %v2773_v50 = vld [vmem:[#allocation3 + $0x4c] ss:$16 sps:$4 sm:$0xff]   ;;  %v2776_v52 = vld [vmem:[#allocation3 + $0x40] ss:$16 sps:$4 sm:$0xff]  }
 0x430   :  { %v1233_v11 = vpop.f32.mrb[15].mxu0  ;;  %v1274_v13 = vpop.f32.mrb[15].mxu1  ;;  %v2779_v44 = vld [vmem:[#allocation3 + $0x48] ss:$16 sps:$4 sm:$0xff]   ;;  %v2782_v2 = vld [vmem:[#allocation3 + $0x64] ss:$16 sps:$4 sm:$0xff]  }
 0x431   :  { %v1288_v15 = vrot.slane %v1280_v42, %v2556_v54  ;;  %v1295_v17 = vrot.slane %v1281_v7, %v2556_v54  ;;  %v2785_v42 = vld [vmem:[#allocation3 + $0x6c] ss:$16 sps:$4 sm:$0xff]   ;;  %v2794_v7 = vld [vmem:[#allocation3 + $0x84] ss:$16 sps:$4 sm:$0xff]   ;;  %v2800_v9 = vld [vmem:[#allocation3 + $0x80] ss:$16 sps:$4 sm:$0xff]  }
 0x432   :  { %v2797_v8 = vld [vmem:[#allocation3 + $0x8c] ss:$16 sps:$4 sm:$0xff]   ;;  %v2803_v11 = vld [vmem:[#allocation3 + $0x88] ss:$16 sps:$4 sm:$0xff]   ;;  %v2806_v13 = vld [vmem:[#allocation3 + $0xa4] ss:$16 sps:$4 sm:$0xff]  }
 0x433   :  { %v1296_v21 = vcombine.low %v1288_v15, %v1295_v17  ;;  %v2809_v15 = vld [vmem:[#allocation3 + $0xac] ss:$16 sps:$4 sm:$0xff]   ;;  %v2812_v17 = vld [vmem:[#allocation3 + $0xa0] ss:$16 sps:$4 sm:$0xff]  }
 0x435   :  { %v1298_v23 = vadd.f32 %v1296_v21, %v532_v19  ;;  %v2815_v19 = vld [vmem:[#allocation3 + $0xa8] ss:$16 sps:$4 sm:$0xff]   ;;  %v2826_v21 = vld [vmem:[#allocation3 + $0x4] ss:$16 sps:$4 sm:$0xff]  }
 0x437   :  { %v1978_v25 = vmul.f32 -1.442695, %v1298_v23  ;;  %v1306_v36 = vrot.slane %v1298_v23, 6  ;;  %v2829_v23 = vld [vmem:[#allocation3 + $0xc] ss:$16 sps:$4 sm:$0xff]  }
 0x439   :  { %2163 = vpow2.f32 %v1978_v25 }
 0x443   :  { %v2164_v0 = vpop.eup %2163 }
 0x444   :  { %v1302_v63 = vadd.f32 1.0, %v2164_v0 }
 0x446   :  { %2165 = vrcp.f32 %v1302_v63 }
 0x447   :  { %2167 = vtanh.f32 %v1306_v36 }
 0x450   :  { %v2166_v28 = vpop.eup %2165 }
 0x451   :  { %v1310_v47 = vrot.slane %v2166_v28, 2  ;;  %v2168_v61 = vpop.eup %2167  ;;  %v1316_v41 = vrot.slane %v2166_v28, 4 }
 0x452   :  { %v1313_v37 = vmul.f32 %v2168_v61, %v2166_v28 }
 0x453   :  { %v1312_v34 = vmul.f32 %v1310_v47, %v2689_v3  ;;  %v2759_v3 = vld [vmem:[#allocation3 + $0x2c] ss:$16 sps:$4 sm:$0xff]  }
 0x455   :  { %v2747_v59 = vadd.f32 %v1313_v37, %v1312_v34 }
 0x457   :  { %2169 = vtanh.f32 %v2747_v59 }
 0x461   :  { %v2170_v40 = vpop.eup %2169 }
 0x462   :  { %v1318_v38 = vmul.f32 %v2170_v40, %v1316_v41 }
 0x464   :  { %v1321_v53 = vpack.c.bf16 %v1318_v38, %v1318_v38 }
 0x466   :  { %1355 = vmatmul.mubr.bf16.vlgmr.msra.gmra.mrb[16].mxu0 %v1321_v53  ;;  %1396 = vmatmul.mubr.bf16.vlgmr.msra.gmra.mrb[16].mxu1 %v1321_v53 }
 0x467   :  { %1451 = vmatpush1.bf16.msra.mxu0 %v2750_v49  ;;  %1492 = vmatpush1.bf16.msra.mxu1 %v2753_v43 }
 0x468   :  { %1452 = vmatprep.subr.bf16.mxu0 %v2756_v33  ;;  %1493 = vmatprep.subr.bf16.mxu1 %v2759_v3 }
 0x469   :  { %1482 = vmatprep.mubr.bf16.mxu0 %v3152_v1  ;;  %1523 = vmatprep.mubr.bf16.mxu1 %v3152_v1 }
 0x46b   :  { %1453 = vmatpush1.bf16.msra.mxu0 %v2764_v45  ;;  %1494 = vmatpush1.bf16.msra.mxu1 %v2767_v48 }
 0x46c   :  { %1454 = vmatprep.subr.bf16.mxu0 %v2770_v46  ;;  %1495 = vmatprep.subr.bf16.mxu1 %v2773_v50 }
 0x46f   :  { %1455 = vmatpush1.bf16.msra.mxu0 %v2776_v52  ;;  %1496 = vmatpush1.bf16.msra.mxu1 %v2779_v44 }
 0x470   :  { %1456 = vmatprep.subr.bf16.mxu0 %v2782_v2  ;;  %1497 = vmatprep.subr.bf16.mxu1 %v2785_v42 }
 0x473   :  { %1457 = vmatpush1.bf16.msra.mxu0 %v2788_v35  ;;  %1498 = vmatpush1.bf16.msra.mxu1 %v2791_v6 }
 0x474   :  { %1458 = vmatprep.subr.bf16.mxu0 %v2794_v7  ;;  %1499 = vmatprep.subr.bf16.mxu1 %v2797_v8 }
 0x477   :  { %1459 = vmatpush1.bf16.msra.mxu0 %v2800_v9  ;;  %1500 = vmatpush1.bf16.msra.mxu1 %v2803_v11 }
 0x478   :  { %1460 = vmatprep.subr.bf16.mxu0 %v2806_v13  ;;  %1501 = vmatprep.subr.bf16.mxu1 %v2809_v15 }
 0x47b   :  { %1461 = vmatpush1.bf16.msra.mxu0 %v2812_v17  ;;  %1502 = vmatpush1.bf16.msra.mxu1 %v2815_v19 }
 0x47c   :  { %1462 = vmatprep.subr.bf16.mxu0 %v2415_v26  ;;  %1503 = vmatprep.subr.bf16.mxu1 %v2417_v27  ;;  %v44_v26 = vld [vmem:[%s3084_s0 + $0xa] sm:$0x3]  ;;  %v45_v27 = vld [vmem:[%s3084_s0 + $0xc] sm:$0x3] }
 0x47d   :  { %164 = vperm.xlu1 %2085, %v44_v26   ;;  %75 = vperm.xlu0 %2084, %v44_v26  }
 0x47f   :  { %1463 = vmatpush1.bf16.msra.mxu0 %v2424_v29  ;;  %1504 = vmatpush1.bf16.msra.mxu1 %v2426_v30  ;;  %v3195_v29 = vmov 2   ;;  %v3196_v30 = vmov 1  }
 0x480   :  { %1464 = vmatprep.subr.bf16.mxu0 %v2430_v31  ;;  %1505 = vmatprep.subr.bf16.mxu1 %v2432_v32  ;;  %v71_v31 = vpop.permute.xlu1 %70  ;;  %v161_v32 = vpop.permute.xlu0 %160 }
 0x481   :  { %2086 = vset.pattern.permute.xlu1 %v3195_v29  ;;  %80 = vperm.xlu0 %2084, %v45_v27   ;;  %v214_v25 = vmul.f32 %v3190_v22, %v161_v32  ;;  %v215_v0 = vmul.f32 %v3191_v24, %v161_v32  ;;  %v125_v63 = vmul.f32 %v3184_v10, %v71_v31 }
 0x482   :  { %283 = vperm.xlu1 %2086, %v44_v26   ;;  %v126_v36 = vmul.f32 %v3185_v12, %v71_v31  ;;  %v127_v28 = vmul.f32 %v3186_v14, %v71_v31  ;;  %v128_v47 = vmul.f32 %v3187_v16, %v71_v31 }
 0x483   :  { %1465 = vmatpush1.bf16.msra.mxu0 %v3180_v4  ;;  %1506 = vmatpush1.bf16.msra.mxu1 %v3181_v5  ;;  %v212_v4 = vmul.f32 %v3188_v18, %v161_v32  ;;  %v213_v5 = vmul.f32 %v3189_v20, %v161_v32 }
 0x484   :  { %1578 = vmatprep.subr.bf16.mxu0 %v2826_v21  ;;  %1619 = vmatprep.subr.bf16.mxu1 %v2829_v23  ;;  %v280_v61 = vpop.permute.xlu1 %279  ;;  %v246_v41 = vadd.f32 %v214_v25, %v127_v28  ;;  %v247_v40 = vadd.f32 %v215_v0, %v128_v47 }
 0x485   :  { %2088 = vset.pattern.permute.xlu0 %v3195_v29  ;;  %v244_v37 = vadd.f32 %v212_v4, %v125_v63  ;;  %v245_v34 = vadd.f32 %v213_v5, %v126_v36  ;;  %v331_v38 = vmul.f32 %v3192_v39, %v280_v61  ;;  %v332_v53 = vmul.f32 %v3193_v62, %v280_v61 }
 0x486   :  { %2087 = vset.pattern.permute.xlu1 %v3196_v30  ;;  %287 = vperm.xlu0 %2088, %v45_v27   ;;  %v333_v26 = vmul.f32 %v3194_v51, %v280_v61 }
 0x487   :  { %168 = vperm.xlu1 %2087, %v45_v27   ;;  %v334_v27 = vmul.f32 %v2527_v60, %v280_v61  ;;  %v363_v29 = vadd.f32 %v331_v38, %v244_v37  ;;  %v364_v32 = vadd.f32 %v332_v53, %v245_v34 }
 0x488   :  { %v365_v12 = vadd.f32 %v333_v26, %v246_v41 }
 0x489   :  { %v366_v10 = vadd.f32 %v334_v27, %v247_v40  ;;  %v417_v14 = vadd.f32 %v2544_v56, %v363_v29  ;;  %v418_v31 = vadd.f32 %v2546_v55, %v364_v32 }
 0x48a   :  { %v419_v4 = vadd.f32 %v2548_v57, %v365_v12 }
 0x48b   :  { %2089 = vset.pattern.permute.xlu1 %v3152_v1  ;;  %v420_v5 = vadd.f32 %v2550_v58, %v366_v10  ;;  %v533_v25 = vcombine.low %v417_v14, %v418_v31 }
 0x48d   :  { %v534_v0 = vcombine.low %v419_v4, %v420_v5  ;;  %v541_v61 = vrot.slane %v533_v25, %v2556_v54 }
 0x48f   :  { %v548_v37 = vrot.slane %v534_v0, %v2556_v54 }
 0x491   :  { %v549_v14 = vcombine.low %v541_v61, %v548_v37 }
 0x539   :  { %v1356_v63 = vpop.f32.mrb[16].mxu0  ;;  %v1397_v36 = vpop.f32.mrb[16].mxu1 }
 0x53a   :  { %v1358_v28 = vpop.f32.mrb[17].mxu0  ;;  %v1399_v47 = vpop.f32.mrb[17].mxu1 }
 0x53b   :  { %v1408_v51 = vcombine.low %v1356_v63, %v1358_v28  ;;  %v1409_v34 = vcombine.low %v1397_v36, %v1399_v47  ;;  %v1360_v41 = vpop.f32.mrb[18].mxu0  ;;  %v1401_v40 = vpop.f32.mrb[18].mxu1 }
 0x53c   :  { %v1361_v38 = vpop.f32.mrb[19].mxu0  ;;  %v1402_v53 = vpop.f32.mrb[19].mxu1  ;;  %v2896_v41 = vld [vmem:[#allocation3 + $0xc0] ss:$16 sps:$4 sm:$0xff]   ;;  %v2899_v40 = vld [vmem:[#allocation3 + $0xc8] ss:$16 sps:$4 sm:$0xff]  }
 0x53d   :  { %v1416_v12 = vrot.slane %v1408_v51, %v2556_v54  ;;  %v1423_v10 = vrot.slane %v1409_v34, %v2556_v54  ;;  %v2893_v34 = vld [vmem:[#allocation3 + $0xcc] ss:$16 sps:$4 sm:$0xff]   ;;  %v2902_v38 = vld [vmem:[#allocation3 + $0xe4] ss:$16 sps:$4 sm:$0xff]  }
 0x53e   :  { %v2905_v53 = vld [vmem:[#allocation3 + $0xec] ss:$16 sps:$4 sm:$0xff]  }
 0x53f   :  { %v1424_v26 = vcombine.low %v1416_v12, %v1423_v10  ;;  %v2908_v12 = vld [vmem:[#allocation3 + $0xe0] ss:$16 sps:$4 sm:$0xff]   ;;  %v2911_v10 = vld [vmem:[#allocation3 + $0xe8] ss:$16 sps:$4 sm:$0xff]  }
 0x540   :  { %3197 = vst [vmem:[#allocation11_spill] sm:$0xff] %v2911_v10 }
 0x541   :  { %v1426_v27 = vadd.f32 %v1424_v26, %v549_v14  ;;  %v46_v14 = vld [vmem:[%s3084_s0 + $0xe] sm:$0x3]  ;;  %v165_v26 = vpop.permute.xlu1 %164 }
 0x542   :  { %85 = vperm.xlu1 %2089, %v46_v14   ;;  %291 = vperm.xlu0 %2088, %v46_v14  }
 0x543   :  { %v1979_v29 = vmul.f32 -1.442695, %v1426_v27  ;;  %v1434_v4 = vrot.slane %v1426_v27, 6  ;;  %v216_v27 = vmul.f32 %v3188_v18, %v165_v26 }
 0x545   :  { %2171 = vpow2.f32 %v1979_v29  ;;  %v217_v29 = vmul.f32 %v3189_v20, %v165_v26  ;;  %v3201_v20 = vld [vmem:[#allocation23_spill] sm:$0xff] }
 0x546   :  { %2090 = vset.pattern.permute.xlu1 %v3196_v30 }
 0x547   :  { %172 = vperm.xlu1 %2090, %v46_v14  }
 0x54f   :  { %v2172_v32 = vpop.eup %2171 }
 0x550   :  { %v1430_v31 = vadd.f32 1.0, %v2172_v32  ;;  %v218_v32 = vmul.f32 %v3190_v22, %v165_v26 }
 0x552   :  { %2173 = vrcp.f32 %v1430_v31  ;;  %v76_v31 = vpop.permute.xlu0 %75 }
 0x553   :  { %2175 = vtanh.f32 %v1434_v4 }
 0x55c   :  { %v2174_v5 = vpop.eup %2173 }
 0x55d   :  { %v1438_v25 = vrot.slane %v2174_v5, 2  ;;  %v2176_v0 = vpop.eup %2175  ;;  %v1444_v51 = vrot.slane %v2174_v5, 4 }
 0x55e   :  { %v1441_v63 = vmul.f32 %v2176_v0, %v2174_v5  ;;  %v3199_v5 = vld [vmem:[#allocation14_spill] sm:$0xff]  ;;  %v3200_v0 = vld [vmem:[#allocation15_spill] sm:$0xff] }
 0x55f   :  { %v1440_v36 = vmul.f32 %v1438_v25, %v2747_v59  ;;  %v2890_v59 = vld [vmem:[#allocation3 + $0xc4] ss:$16 sps:$4 sm:$0xff]   ;;  %v130_v25 = vmul.f32 %v3199_v5, %v76_v31 }
 0x561   :  { %v2863_v28 = vadd.f32 %v1441_v63, %v1440_v36  ;;  %v131_v63 = vmul.f32 %v3200_v0, %v76_v31  ;;  %v132_v36 = vmul.f32 %v3187_v16, %v76_v31 }
 0x563   :  { %2177 = vtanh.f32 %v2863_v28 }
 0x56d   :  { %v2178_v47 = vpop.eup %2177 }
 0x56e   :  { %v1446_v61 = vmul.f32 %v2178_v47, %v1444_v51  ;;  %v249_v51 = vadd.f32 %v217_v29, %v130_v25  ;;  %v250_v47 = vadd.f32 %v218_v32, %v131_v63 }
 0x570   :  { %v1449_v37 = vpack.c.bf16 %v1446_v61, %v1446_v61 }
 0x572   :  { %1483 = vmatmul.mubr.bf16.vlgmr.msra.gmra.mrb[20].mxu0 %v1449_v37  ;;  %1524 = vmatmul.mubr.bf16.vlgmr.msra.gmra.mrb[20].mxu1 %v1449_v37  ;;  %v284_v37 = vpop.permute.xlu1 %283 }
 0x573   :  { %1579 = vmatpush1.bf16.msra.mxu0 %v2750_v49  ;;  %1620 = vmatpush1.bf16.msra.mxu1 %v2753_v43  ;;  %v335_v14 = vmul.f32 %v3192_v39, %v284_v37  ;;  %v336_v22 = vmul.f32 %v3193_v62, %v284_v37 }
 0x574   :  { %1580 = vmatprep.subr.bf16.mxu0 %v2756_v33  ;;  %1621 = vmatprep.subr.bf16.mxu1 %v2759_v3 }
 0x575   :  { %1610 = vmatprep.mubr.bf16.mxu0 %v3152_v1  ;;  %1651 = vmatprep.mubr.bf16.mxu1 %v3152_v1 }
 0x577   :  { %1581 = vmatpush1.bf16.msra.mxu0 %v2764_v45  ;;  %1622 = vmatpush1.bf16.msra.mxu1 %v2767_v48 }
 0x578   :  { %1582 = vmatprep.subr.bf16.mxu0 %v2770_v46  ;;  %1623 = vmatprep.subr.bf16.mxu1 %v2773_v50 }
 0x57b   :  { %1583 = vmatpush1.bf16.msra.mxu0 %v2776_v52  ;;  %1624 = vmatpush1.bf16.msra.mxu1 %v2779_v44 }
 0x57c   :  { %1584 = vmatprep.subr.bf16.mxu0 %v2782_v2  ;;  %1625 = vmatprep.subr.bf16.mxu1 %v2785_v42 }
 0x57f   :  { %1585 = vmatpush1.bf16.msra.mxu0 %v2788_v35  ;;  %1626 = vmatpush1.bf16.msra.mxu1 %v2791_v6 }
 0x580   :  { %1586 = vmatprep.subr.bf16.mxu0 %v2794_v7  ;;  %1627 = vmatprep.subr.bf16.mxu1 %v2797_v8 }
 0x583   :  { %1587 = vmatpush1.bf16.msra.mxu0 %v2800_v9  ;;  %1628 = vmatpush1.bf16.msra.mxu1 %v2803_v11 }
 0x584   :  { %1588 = vmatprep.subr.bf16.mxu0 %v2806_v13  ;;  %1629 = vmatprep.subr.bf16.mxu1 %v2809_v15 }
 0x587   :  { %1589 = vmatpush1.bf16.msra.mxu0 %v2812_v17  ;;  %1630 = vmatpush1.bf16.msra.mxu1 %v2815_v19 }
 0x588   :  { %1590 = vmatprep.subr.bf16.mxu0 %v2890_v59  ;;  %1631 = vmatprep.subr.bf16.mxu1 %v2893_v34 }
 0x58b   :  { %1591 = vmatpush1.bf16.msra.mxu0 %v2896_v41  ;;  %1632 = vmatpush1.bf16.msra.mxu1 %v2899_v40 }
 0x58c   :  { %1592 = vmatprep.subr.bf16.mxu0 %v2902_v38  ;;  %1633 = vmatprep.subr.bf16.mxu1 %v2905_v53 }
 0x58f   :  { %1593 = vmatpush1.bf16.msra.mxu0 %v2908_v12  ;;  %1634 = vmatpush1.bf16.msra.mxu1 %v2911_v10 }
 0x590   :  { %1706 = vmatprep.subr.bf16.mxu0 %v2826_v21  ;;  %1747 = vmatprep.subr.bf16.mxu1 %v2829_v23  ;;  %v219_v21 = vmul.f32 %v3191_v24, %v165_v26  ;;  %v3198_v23 = vld [vmem:[#allocation13_spill] sm:$0xff]  ;;  %v337_v26 = vmul.f32 %v3201_v20, %v284_v37  ;;  %v338_v24 = vmul.f32 %v2527_v60, %v284_v37 }
 0x591   :  { %v129_v4 = vmul.f32 %v3198_v23, %v76_v31  ;;  %v368_v23 = vadd.f32 %v336_v22, %v249_v51 }
 0x592   :  { %v251_v61 = vadd.f32 %v219_v21, %v132_v36  ;;  %v369_v5 = vadd.f32 %v337_v26, %v250_v47 }
 0x593   :  { %v248_v30 = vadd.f32 %v216_v27, %v129_v4  ;;  %v422_v27 = vadd.f32 %v2546_v55, %v368_v23 }
 0x594   :  { %v370_v10 = vadd.f32 %v338_v24, %v251_v61  ;;  %v423_v29 = vadd.f32 %v2548_v57, %v369_v5 }
 0x595   :  { %v367_v18 = vadd.f32 %v335_v14, %v248_v30 }
 0x596   :  { %v424_v32 = vadd.f32 %v2550_v58, %v370_v10 }
 0x597   :  { %v421_v0 = vadd.f32 %v2544_v56, %v367_v18 }
 0x598   :  { %v551_v31 = vcombine.low %v423_v29, %v424_v32 }
 0x599   :  { %v550_v21 = vcombine.low %v421_v0, %v422_v27 }
 0x59a   :  { %v565_v22 = vrot.slane %v551_v31, %v2556_v54 }
 0x59b   :  { %v558_v30 = vrot.slane %v550_v21, %v2556_v54 }
 0x59d   :  { %v566_v0 = vcombine.low %v558_v30, %v565_v22 }
 0x645   :  { %v1484_v4 = vpop.f32.mrb[20].mxu0  ;;  %v1525_v25 = vpop.f32.mrb[20].mxu1 }
 0x646   :  { %v1486_v63 = vpop.f32.mrb[21].mxu0  ;;  %v1527_v36 = vpop.f32.mrb[21].mxu1 }
 0x647   :  { %v1536_v20 = vcombine.low %v1484_v4, %v1486_v63  ;;  %v1537_v24 = vcombine.low %v1525_v25, %v1527_v36  ;;  %v1488_v51 = vpop.f32.mrb[22].mxu0  ;;  %v1529_v18 = vpop.f32.mrb[22].mxu1 }
 0x648   :  { %v1489_v47 = vpop.f32.mrb[23].mxu0  ;;  %v1530_v23 = vpop.f32.mrb[23].mxu1 }
 0x649   :  { %v1544_v5 = vrot.slane %v1536_v20, %v2556_v54  ;;  %v1551_v10 = vrot.slane %v1537_v24, %v2556_v54 }
 0x64b   :  { %v1552_v61 = vcombine.low %v1544_v5, %v1551_v10 }
 0x64d   :  { %v1554_v37 = vadd.f32 %v1552_v61, %v566_v0 }
 0x64f   :  { %v1980_v14 = vmul.f32 -1.442695, %v1554_v37  ;;  %v1562_v29 = vrot.slane %v1554_v37, 6 }
 0x651   :  { %2179 = vpow2.f32 %v1980_v14 }
 0x65b   :  { %v2180_v26 = vpop.eup %2179 }
 0x65c   :  { %v1558_v27 = vadd.f32 1.0, %v2180_v26 }
 0x65e   :  { %2181 = vrcp.f32 %v1558_v27 }
 0x65f   :  { %2183 = vtanh.f32 %v1562_v29 }
 0x668   :  { %v2182_v32 = vpop.eup %2181 }
 0x669   :  { %v1566_v21 = vrot.slane %v2182_v32, 2  ;;  %v2184_v31 = vpop.eup %2183  ;;  %v1572_v20 = vrot.slane %v2182_v32, 4 }
 0x66a   :  { %v1569_v4 = vmul.f32 %v2184_v31, %v2182_v32 }
 0x66b   :  { %v1568_v25 = vmul.f32 %v1566_v21, %v2863_v28 }
 0x66d   :  { %v2941_v63 = vadd.f32 %v1569_v4, %v1568_v25 }
 0x66f   :  { %2185 = vtanh.f32 %v2941_v63 }
 0x679   :  { %v2186_v36 = vpop.eup %2185 }
 0x67a   :  { %v1574_v30 = vmul.f32 %v2186_v36, %v1572_v20 }
 0x67c   :  { %v1577_v22 = vpack.c.bf16 %v1574_v30, %v1574_v30 }
 0x67e   :  { %1611 = vmatmul.mubr.bf16.vlgmr.msra.gmra.mrb[24].mxu0 %v1577_v22  ;;  %1652 = vmatmul.mubr.bf16.vlgmr.msra.gmra.mrb[24].mxu1 %v1577_v22 }
 0x67f   :  { %1707 = vmatpush1.bf16.msra.mxu0 %v2750_v49  ;;  %1748 = vmatpush1.bf16.msra.mxu1 %v2753_v43  ;;  %v81_v49 = vpop.permute.xlu0 %80  ;;  %v169_v43 = vpop.permute.xlu1 %168 }
 0x680   :  { %1708 = vmatprep.subr.bf16.mxu0 %v2756_v33  ;;  %1749 = vmatprep.subr.bf16.mxu1 %v2759_v3  ;;  %v3203_v33 = vld [vmem:[#allocation13_spill] sm:$0xff] }
 0x681   :  { %1738 = vmatprep.mubr.bf16.mxu0 %v3152_v1  ;;  %1779 = vmatprep.mubr.bf16.mxu1 %v3152_v1  ;;  %v3202_v1 = vld [vmem:[#allocation11_spill] sm:$0xff]  ;;  %v133_v3 = vmul.f32 %v3203_v33, %v81_v49 }
 0x683   :  { %1709 = vmatpush1.bf16.msra.mxu0 %v2764_v45  ;;  %1750 = vmatpush1.bf16.msra.mxu1 %v2767_v48  ;;  %v3204_v45 = vld [vmem:[#allocation14_spill] sm:$0xff] }
 0x684   :  { %1710 = vmatprep.subr.bf16.mxu0 %v2770_v46  ;;  %1751 = vmatprep.subr.bf16.mxu1 %v2773_v50  ;;  %v134_v48 = vmul.f32 %v3204_v45, %v81_v49  ;;  %v3205_v46 = vld [vmem:[#allocation17_spill] sm:$0xff] }
 0x685   :  { %v220_v50 = vmul.f32 %v3205_v46, %v169_v43 }
 0x687   :  { %1711 = vmatpush1.bf16.msra.mxu0 %v2776_v52  ;;  %1752 = vmatpush1.bf16.msra.mxu1 %v2779_v44  ;;  %v3206_v52 = vld [vmem:[#allocation18_spill] sm:$0xff] }
 0x688   :  { %1712 = vmatprep.subr.bf16.mxu0 %v2782_v2  ;;  %1753 = vmatprep.subr.bf16.mxu1 %v2785_v42  ;;  %v221_v44 = vmul.f32 %v3206_v52, %v169_v43  ;;  %v3207_v2 = vld [vmem:[#allocation15_spill] sm:$0xff] }
 0x689   :  { %v135_v42 = vmul.f32 %v3207_v2, %v81_v49 }
 0x68b   :  { %1713 = vmatpush1.bf16.msra.mxu0 %v2788_v35  ;;  %1754 = vmatpush1.bf16.msra.mxu1 %v2791_v6  ;;  %v136_v35 = vmul.f32 %v3187_v16, %v81_v49  ;;  %v3208_v6 = vld [vmem:[#allocation19_spill] sm:$0xff] }
 0x68c   :  { %1714 = vmatprep.subr.bf16.mxu0 %v2794_v7  ;;  %1755 = vmatprep.subr.bf16.mxu1 %v2797_v8  ;;  %v222_v7 = vmul.f32 %v3208_v6, %v169_v43  ;;  %v3209_v8 = vld [vmem:[#allocation20_spill] sm:$0xff] }
 0x68e   :  { %v254_v28 = vadd.f32 %v222_v7, %v135_v42 }
 0x68f   :  { %1715 = vmatpush1.bf16.msra.mxu0 %v2800_v9  ;;  %1756 = vmatpush1.bf16.msra.mxu1 %v2803_v11  ;;  %v223_v9 = vmul.f32 %v3209_v8, %v169_v43  ;;  %v288_v11 = vpop.permute.xlu0 %287 }
 0x690   :  { %1716 = vmatprep.subr.bf16.mxu0 %v2806_v13  ;;  %1757 = vmatprep.subr.bf16.mxu1 %v2809_v15  ;;  %v252_v13 = vadd.f32 %v220_v50, %v133_v3  ;;  %v253_v15 = vadd.f32 %v221_v44, %v134_v48 }
 0x693   :  { %1717 = vmatpush1.bf16.msra.mxu0 %v2812_v17  ;;  %1758 = vmatpush1.bf16.msra.mxu1 %v2815_v19  ;;  %v339_v17 = vmul.f32 %v3192_v39, %v288_v11  ;;  %v340_v19 = vmul.f32 %v3193_v62, %v288_v11 }
 0x694   :  { %1718 = vmatprep.subr.bf16.mxu0 %v2890_v59  ;;  %1759 = vmatprep.subr.bf16.mxu1 %v2893_v34  ;;  %v255_v59 = vadd.f32 %v223_v9, %v136_v35  ;;  %v3210_v34 = vld [vmem:[#allocation23_spill] sm:$0xff] }
 0x697   :  { %1719 = vmatpush1.bf16.msra.mxu0 %v2896_v41  ;;  %1760 = vmatpush1.bf16.msra.mxu1 %v2899_v40  ;;  %v341_v41 = vmul.f32 %v3210_v34, %v288_v11  ;;  %v342_v40 = vmul.f32 %v2527_v60, %v288_v11 }
 0x698   :  { %1720 = vmatprep.subr.bf16.mxu0 %v2902_v38  ;;  %1761 = vmatprep.subr.bf16.mxu1 %v2905_v53  ;;  %v371_v38 = vadd.f32 %v339_v17, %v252_v13  ;;  %v372_v53 = vadd.f32 %v340_v19, %v253_v15  ;;  %v1831_v19 = vld [vmem:[%s3088_s4] sm:$0xff] }
 0x699   :  { %v374_v24 = vadd.f32 %v342_v40, %v255_v59  ;;  %v1834_v40 = vld [vmem:[%s3088_s4 + $0x18] sm:$0xff] }
 0x69a   :  { %v425_v51 = vadd.f32 %v2544_v56, %v371_v38  ;;  %v426_v18 = vadd.f32 %v2546_v55, %v372_v53  ;;  %v1835_v53 = vld [vmem:[%s3088_s4 + $0x20] sm:$0xff] }
 0x69b   :  { %1721 = vmatpush1.bf16.msra.mxu0 %v2908_v12  ;;  %1762 = vmatpush1.bf16.msra.mxu1 %v3202_v1  ;;  %v373_v12 = vadd.f32 %v341_v41, %v254_v28  ;;  %v428_v23 = vadd.f32 %v2550_v58, %v374_v24  ;;  %v1832_v28 = vld [vmem:[%s3088_s4 + $0x8] sm:$0xff]  ;;  %v1833_v41 = vld [vmem:[%s3088_s4 + $0x10] sm:$0xff] }
 0x69c   :  { %v567_v5 = vcombine.low %v425_v51, %v426_v18  ;;  %v2037_v59 = vpack.c.bf16 %v1832_v28, %v1831_v19  ;;  %v2040_v38 = vpack.c.bf16 %v1834_v40, %v1833_v41  ;;  %v1837_v51 = vld [vmem:[%s3088_s4 + $0x30] sm:$0xff]  ;;  %v1838_v18 = vld [vmem:[%s3088_s4 + $0x38] sm:$0xff] }
 0x69d   :  { %v427_v47 = vadd.f32 %v2548_v57, %v373_v12  ;;  %v1836_v12 = vld [vmem:[%s3088_s4 + $0x28] sm:$0xff] }
 0x69e   :  { %v575_v27 = vrot.slane %v567_v5, %v2556_v54  ;;  %v2043_v24 = vpack.c.bf16 %v1836_v12, %v1835_v53  ;;  %v1840_v5 = vld [vmem:[%s3088_s4 + $0x48] sm:$0xff] }
 0x69f   :  { %v568_v10 = vcombine.low %v427_v47, %v428_v23  ;;  %v2046_v47 = vpack.c.bf16 %v1838_v18, %v1837_v51  ;;  %v1839_v23 = vld [vmem:[%s3088_s4 + $0x40] sm:$0xff] }
 0x6a1   :  { %v582_v29 = vrot.slane %v568_v10, %v2556_v54  ;;  %v2049_v10 = vpack.c.bf16 %v1840_v5, %v1839_v23 }
 0x6a3   :  { %v583_v30 = vcombine.low %v575_v27, %v582_v29  ;;  %v1844_v27 = vld [vmem:[%s3088_s4 + $0x68] sm:$0xff] }
 0x751   :  { %v1612_v0 = vpop.f32.mrb[24].mxu0  ;;  %v1653_v61 = vpop.f32.mrb[24].mxu1 }
 0x752   :  { %v1614_v37 = vpop.f32.mrb[25].mxu0  ;;  %v1655_v14 = vpop.f32.mrb[25].mxu1 }
 0x753   :  { %v1664_v26 = vcombine.low %v1612_v0, %v1614_v37  ;;  %v1665_v32 = vcombine.low %v1653_v61, %v1655_v14  ;;  %v1616_v21 = vpop.f32.mrb[26].mxu0  ;;  %v1657_v31 = vpop.f32.mrb[26].mxu1  ;;  %v2292_v0 = vmov 0.0   ;;  %v1841_v61 = vld [vmem:[%s3088_s4 + $0x50] sm:$0xff]  ;;  %v1842_v37 = vld [vmem:[%s3088_s4 + $0x58] sm:$0xff] }
 0x754   :  { %v1617_v4 = vpop.f32.mrb[27].mxu0  ;;  %v1658_v25 = vpop.f32.mrb[27].mxu1  ;;  %v2052_v14 = vpack.c.bf16 %v1842_v37, %v1841_v61  ;;  %v1846_v21 = vld [vmem:[%s3088_s4 + $0x78] sm:$0xff] }
 0x755   :  { %v1672_v20 = vrot.slane %v1664_v26, %v2556_v54  ;;  %v1679_v36 = vrot.slane %v1665_v32, %v2556_v54  ;;  %v1843_v26 = vld [vmem:[%s3088_s4 + $0x60] sm:$0xff]  ;;  %v1845_v32 = vld [vmem:[%s3088_s4 + $0x70] sm:$0xff]  ;;  %v86_v4 = vpop.permute.xlu1 %85 }
 0x756   :  { %v2055_v29 = vpack.c.bf16 %v1844_v27, %v1843_v26  ;;  %v2058_v31 = vpack.c.bf16 %v1846_v21, %v1845_v32 }
 0x757   :  { %v1680_v22 = vcombine.low %v1672_v20, %v1679_v36  ;;  %v137_v20 = vmul.f32 %v3203_v33, %v86_v4  ;;  %v138_v36 = vmul.f32 %v3204_v45, %v86_v4 }
 0x759   :  { %v1682_v1 = vadd.f32 %v1680_v22, %v583_v30  ;;  %v173_v25 = vpop.permute.xlu1 %172  ;;  %v139_v30 = vmul.f32 %v3207_v2, %v86_v4  ;;  %v140_v22 = vmul.f32 %v3187_v16, %v86_v4 }
 0x75b   :  { %v1981_v49 = vmul.f32 -1.442695, %v1682_v1  ;;  %v1690_v48 = vrot.slane %v1682_v1, 6  ;;  %v224_v1 = vmul.f32 %v3205_v46, %v173_v25 }
 0x75d   :  { %2187 = vpow2.f32 %v1981_v49  ;;  %v225_v49 = vmul.f32 %v3206_v52, %v173_v25  ;;  %v256_v2 = vadd.f32 %v224_v1, %v137_v20 }
 0x767   :  { %v2188_v43 = vpop.eup %2187 }
 0x768   :  { %v1686_v3 = vadd.f32 1.0, %v2188_v43  ;;  %v226_v43 = vmul.f32 %v3208_v6, %v173_v25 }
 0x76a   :  { %2189 = vrcp.f32 %v1686_v3  ;;  %v227_v3 = vmul.f32 %v3209_v8, %v173_v25  ;;  %v258_v16 = vadd.f32 %v226_v43, %v139_v30 }
 0x76b   :  { %2191 = vtanh.f32 %v1690_v48  ;;  %v292_v48 = vpop.permute.xlu0 %291 }
 0x76c   :  { %v345_v33 = vmul.f32 %v3210_v34, %v292_v48  ;;  %v346_v45 = vmul.f32 %v2527_v60, %v292_v48 }
 0x76e   :  { %v377_v52 = vadd.f32 %v345_v33, %v258_v16 }
 0x774   :  { %v2190_v50 = vpop.eup %2189 }
 0x775   :  { %v1694_v44 = vrot.slane %v2190_v50, 2  ;;  %v2192_v42 = vpop.eup %2191  ;;  %v1700_v11 = vrot.slane %v2190_v50, 4 }
 0x776   :  { %v1697_v35 = vmul.f32 %v2192_v42, %v2190_v50  ;;  %v343_v50 = vmul.f32 %v3192_v39, %v292_v48  ;;  %v257_v42 = vadd.f32 %v225_v49, %v138_v36  ;;  %v431_v39 = vadd.f32 %v2548_v57, %v377_v52 }
 0x777   :  { %v1696_v7 = vmul.f32 %v1694_v44, %v2941_v63  ;;  %v2290_v63 = vmov 0.0|0.0   ;;  %v344_v44 = vmul.f32 %v3193_v62, %v292_v48 }
 0x778   :  { %2036 = vmatprep.subr.bf16.mxu0 %v2290_v63  ;;  %v375_v46 = vadd.f32 %v343_v50, %v256_v2 }
 0x779   :  { %v2997_v9 = vadd.f32 %v1697_v35, %v1696_v7  ;;  %v259_v35 = vadd.f32 %v227_v3, %v140_v22  ;;  %v376_v7 = vadd.f32 %v344_v44, %v257_v42 }
 0x77a   :  { %v429_v6 = vadd.f32 %v2544_v56, %v375_v46 }
 0x77b   :  { %2193 = vtanh.f32 %v2997_v9  ;;  %v430_v8 = vadd.f32 %v2546_v55, %v376_v7 }
 0x785   :  { %v2194_v13 = vpop.eup %2193 }
 0x786   :  { %v1702_v15 = vmul.f32 %v2194_v13, %v1700_v11  ;;  %v378_v11 = vadd.f32 %v346_v45, %v259_v35  ;;  %v584_v13 = vcombine.low %v429_v6, %v430_v8 }
 0x788   :  { %v1705_v17 = vpack.c.bf16 %v1702_v15, %v1702_v15  ;;  %v432_v62 = vadd.f32 %v2550_v58, %v378_v11 }
 0x78a   :  { %1739 = vmatmul.mubr.bf16.vlgmr.msra.gmra.mrb[28].mxu0 %v1705_v17  ;;  %1780 = vmatmul.mubr.bf16.vlgmr.msra.gmra.mrb[28].mxu1 %v1705_v17  ;;  %v585_v34 = vcombine.low %v431_v39, %v432_v62 }
 0x78b   :  { %2038 = vmatpush3.bf16.msra.mxu0 %v2037_v59  ;;  %2033 = vmatprep.mubr.msk.f32.mxu0 %vm2291_vm0, %v2292_v0  ;;  %v592_v59 = vrot.slane %v584_v13, %v2556_v54 }
 0x78c   :  { %2039 = vmatprep.subr.bf16.mxu0 %v2290_v63 }
 0x78f   :  { %2041 = vmatpush3.bf16.msra.mxu0 %v2040_v38 }
 0x790   :  { %2042 = vmatprep.subr.bf16.mxu0 %v2290_v63 }
 0x793   :  { %2044 = vmatpush3.bf16.msra.mxu0 %v2043_v24 }
 0x794   :  { %2045 = vmatprep.subr.bf16.mxu0 %v2290_v63 }
 0x797   :  { %2047 = vmatpush3.bf16.msra.mxu0 %v2046_v47 }
 0x798   :  { %2048 = vmatprep.subr.bf16.mxu0 %v2290_v63 }
 0x79b   :  { %2050 = vmatpush3.bf16.msra.mxu0 %v2049_v10 }
 0x79c   :  { %2051 = vmatprep.subr.bf16.mxu0 %v2290_v63 }
 0x79f   :  { %2053 = vmatpush3.bf16.msra.mxu0 %v2052_v14 }
 0x7a0   :  { %2054 = vmatprep.subr.bf16.mxu0 %v2290_v63 }
 0x7a3   :  { %2056 = vmatpush3.bf16.msra.mxu0 %v2055_v29  ;;  %v1983_v29 = vld [vmem:[%s3089_s5] ss:$0 sm:$0xff] }
 0x7a4   :  { %2057 = vmatprep.subr.bf16.mxu0 %v2290_v63  ;;  %v599_v63 = vrot.slane %v585_v34, %v2556_v54 }
 0x7a6   :  { %v600_v53 = vcombine.low %v592_v59, %v599_v63 }
 0x7a7   :  { %2059 = vmatpush3.bf16.msra.mxu0 %v2058_v31 }
 0x85d   :  { %v1740_v15 = vpop.f32.mrb[28].mxu0  ;;  %v1781_v60 = vpop.f32.mrb[28].mxu1 }
 0x85e   :  { %v1742_v17 = vpop.f32.mrb[29].mxu0  ;;  %v1783_v19 = vpop.f32.mrb[29].mxu1 }
 0x85f   :  { %v1792_v28 = vcombine.low %v1740_v15, %v1742_v17  ;;  %v1793_v41 = vcombine.low %v1781_v60, %v1783_v19  ;;  %v1744_v40 = vpop.f32.mrb[30].mxu0  ;;  %v1785_v56 = vpop.f32.mrb[30].mxu1 }
 0x860   :  { %v1745_v38 = vpop.f32.mrb[31].mxu0  ;;  %v1786_v55 = vpop.f32.mrb[31].mxu1 }
 0x861   :  { %v1800_v57 = vrot.slane %v1792_v28, %v2556_v54  ;;  %v1807_v58 = vrot.slane %v1793_v41, %v2556_v54 }
 0x863   :  { %v1808_v12 = vcombine.low %v1800_v57, %v1807_v58 }
 0x865   :  { %v1810_v24 = vadd.f32 %v1808_v12, %v600_v53 }
 0x867   :  { %v1982_v51 = vmul.f32 -1.442695, %v1810_v24  ;;  %v1818_v23 = vrot.slane %v1810_v24, 6 }
 0x869   :  { %2195 = vpow2.f32 %v1982_v51 }
 0x873   :  { %v2196_v18 = vpop.eup %2195 }
 0x874   :  { %v1814_v47 = vadd.f32 1.0, %v2196_v18 }
 0x876   :  { %2197 = vrcp.f32 %v1814_v47 }
 0x877   :  { %2199 = vtanh.f32 %v1818_v23 }
 0x880   :  { %v2198_v5 = vpop.eup %2197 }
 0x881   :  { %v1822_v10 = vrot.slane %v2198_v5, 2  ;;  %v2200_v0 = vpop.eup %2199  ;;  %v1828_v26 = vrot.slane %v2198_v5, 4 }
 0x882   :  { %v1825_v61 = vmul.f32 %v2200_v0, %v2198_v5 }
 0x883   :  { %v1824_v37 = vmul.f32 %v1822_v10, %v2997_v9 }
 0x885   :  { %v1826_v14 = vadd.f32 %v1825_v61, %v1824_v37 }
 0x887   :  { %2201 = vtanh.f32 %v1826_v14 }
 0x891   :  { %v2202_v54 = vpop.eup %2201 }
 0x892   :  { %v1830_v27 = vmul.f32 %v2202_v54, %v1828_v26 }
 0x894   :  { %2034 = vmatmul.mubr.f32.vlgmr.msra.gmra.mrb[32].mxu0 %v1830_v27 }
 0x967   :  { %v1920_v32 = vpop.f32.mrb[32].mxu0 }
 0x968   :  { %v1921_v21 = vadd.f32 %v1983_v29, %v1920_v32  ;;  %v2035_v31 = vpop.f32.mrb[33].mxu0 }
 0x96a   :  { %1925 = vst.msk [vmem:[#allocation6] sm:$0x3] %vm1924_vm1, %v1921_v21 }
 0x96b   :  { %2268 = shalt.err (!%p2265_p12)
}
 0x96c   :  { %s2269_s16 = scalar_lea.hbm %s3090_s6, 32 }
 0x96d   :  { %p2270_p13 = scmp.ne.s32.totalorder %s3090_s6, %s2269_s16  ;;  %p2273_p0 = scmp.lt.u32.totalorder %s2269_s16, %s3090_s6 }
 0x96f   :  { %p2275_p1 = pnand %p2273_p0, %p2270_p13 }
 0x971   :  { %2278 = shalt.err (!%p2275_p1)
}
 0x972   :  { %1935 = dma.vmem_to_hbm [thread:$0]  %s1933_s12, 32, %s3090_s6, [#allocation5]  }
 0x973   :  { %2281 = dma.done.wait [#allocation5], 32  }
 0x974   :  { %2282 = vsyncadd [#allocation5], 4294967264 }
 0x975   :  { %1939 = vsyncpa [#allocation4], 1 }
 0x976   :  { %1940 = vsyncpa [#allocation5], 1 }

</bundles_post_ra>
